<compile_context>
chip_gen: v5e
topology: v5e:2x2
jax: 0.10.0
libtpu: 0.0.40
codegen_flags: <defaults>
</compile_context>

<pallas_src>
import functools

import jax
import jax.numpy as jnp
from jax import lax
from jax.experimental import pallas as pl
from jax.experimental.pallas import tpu as pltpu


def _clstm_kernel(xcol_ref, w_ref, b_ref, c_ref, h_out_ref, c_out_ref, *,
                  F, use_bf16_gates):
    # xcol_ref: (1, K, HWb)  bf16  full FS*FS im2col of concat(x, h), HW lane-dense
    # w_ref:    (4F, K)      bf16  conv weights, transposed form
    # b_ref:    (4F, 1)      f32   conv bias (lane-broadcast)
    # c_ref:    (1, F, HWb)  f32   previous cell state (flattened NCHW)
    # h_out_ref:(1, F, HWb)  out dtype ; c_out_ref: (1, F, HWb) f32

    # Single transposed-form conv matmul: result lands directly in the
    # gate-friendly (4F, HWb) layout; HWb streams through the MXU lanes.
    acc = jnp.dot(w_ref[...], xcol_ref[0],
                  preferred_element_type=jnp.float32)          # (4F, HWb) f32
    acc = acc + b_ref[...]                                     # one bcast add

    gate_dtype = jnp.bfloat16 if use_bf16_gates else jnp.float32
    a = acc.astype(gate_dtype)

    def _sigmoid(z):
        # sigmoid(z) == 0.5*(1 + tanh(z/2)): one EUP op instead of exp+recip.
        return 0.5 * (jnp.tanh(0.5 * z) + 1.0)

    c_prev = c_ref[0]                                          # (F, HWb) f32

    # Narrow live ranges: consume i/f/g into next_c before touching o.
    # Gate order matches torch.split(A, F, dim=1): i, f, o, g.
    i = _sigmoid(a[0 * F:1 * F, :]).astype(jnp.float32)
    f = _sigmoid(a[1 * F:2 * F, :]).astype(jnp.float32)
    g = jnp.tanh(a[3 * F:4 * F, :]).astype(jnp.float32)
    next_c = f * c_prev + i * g                                # f32

    o = _sigmoid(a[2 * F:3 * F, :]).astype(jnp.float32)
    next_h = o * jnp.tanh(next_c)

    c_out_ref[0] = next_c.astype(c_out_ref.dtype)
    h_out_ref[0] = next_h.astype(h_out_ref.dtype)


def clstm_cell_forward(x_nchw, h_nchw, c_nchw, weight_hwio, bias, *,
                       filter_size, hw_block=None, use_bf16_gates=None):
    """ConvLSTM cell forward. PyTorch-layout NCHW in, NCHW out.

    Returns (next_h, next_c).  next_c is always float32 so that a recurrent
    scan in reduced-precision activations does not truncate the cell state.
    Note: x/h are cast to bf16 for the conv matmul (f32 accumulation); over a
    very long scan this introduces small drift vs a pure-f32 recurrence.
    """
    B, Cin, H, W = x_nchw.shape
    F = h_nchw.shape[1]
    FS = filter_size
    if FS % 2 != 1:
        raise ValueError("filter_size must be odd (PyTorch module uses "
                         "(filter_size - 1) / 2 'same' padding).")
    pad = (FS - 1) // 2
    C = Cin + F
    K = FS * FS * C
    HW = H * W

    if hw_block is None:
        hw_block = HW                      # single tile at 16x16; split for big images
    if HW % hw_block != 0 or not (hw_block == HW or hw_block % 128 == 0):
        raise ValueError("hw_block must divide H*W and be 128-lane aligned.")
    num_hw = HW // hw_block

    if use_bf16_gates is None:
        # bf16 transcendentals only pay off on chips with bf16 VPU/EUP (v6e/v7x).
        kind = jax.devices()[0].device_kind.lower()
        use_bf16_gates = not any(t in kind for t in ("v2", "v3", "v4", "v5"))

    # ---- wrapper-side layout prep (tiny fused XLA ops at this size).
    # Full FS*FS im2col with HW lane-dense so the kernel is one matmul whose
    # result is already in (4F, HW) gate layout (no in-kernel transpose).
    x = jnp.transpose(x_nchw, (0, 2, 3, 1))                    # (B, H, W, Cin)
    h = jnp.transpose(h_nchw, (0, 2, 3, 1))                    # (B, H, W, F)
    combined = jnp.concatenate([x, h], axis=-1)                # (B, H, W, C)
    xpad = jnp.pad(combined, ((0, 0), (pad, pad), (pad, pad), (0, 0)))
    patches = jnp.stack([xpad[:, kh:kh + H, kw:kw + W, :]
                         for kh in range(FS) for kw in range(FS)],
                        axis=1)                                # (B, FS*FS, H, W, C)
    xcol = jnp.transpose(patches, (0, 1, 4, 2, 3)).reshape(B, K, HW)
    xcol = xcol.astype(jnp.bfloat16)                           # (B, K, HW)

    # weight_hwio[kh, kw, c, o] -> w2[o, (kh*FS + kw)*C + c]
    w2 = jnp.transpose(weight_hwio, (3, 0, 1, 2)).reshape(4 * F, K)
    w2 = w2.astype(jnp.bfloat16)                               # (4F, K)
    b2 = bias.reshape(4 * F, 1).astype(jnp.float32)            # (4F, 1)
    c_in = c_nchw.reshape(B, F, HW).astype(jnp.float32)        # free NCHW reshape

    kernel = functools.partial(_clstm_kernel, F=F,
                               use_bf16_gates=use_bf16_gates)
    h_dtype = x_nchw.dtype

    next_h, next_c = pl.pallas_call(
        kernel,
        out_shape=[jax.ShapeDtypeStruct((B, F, HW), h_dtype),
                   jax.ShapeDtypeStruct((B, F, HW), jnp.float32)],
        grid_spec=pltpu.PrefetchScalarGridSpec(
            num_scalar_prefetch=0,
            grid=(B, num_hw),
            in_specs=[
                pl.BlockSpec((1, K, hw_block), lambda b, t: (b, 0, t)),
                pl.BlockSpec((4 * F, K), lambda b, t: (0, 0)),      # resident
                pl.BlockSpec((4 * F, 1), lambda b, t: (0, 0)),      # resident
                pl.BlockSpec((1, F, hw_block), lambda b, t: (b, 0, t)),
            ],
            out_specs=[
                pl.BlockSpec((1, F, hw_block), lambda b, t: (b, 0, t)),
                pl.BlockSpec((1, F, hw_block), lambda b, t: (b, 0, t)),
            ],
        ),
        compiler_params=pltpu.CompilerParams(
            dimension_semantics=("parallel", "parallel")),
    )(xcol, w2, b2, c_in)

    # Back to PyTorch NCHW (pure reshape, no transpose).
    return next_h.reshape(B, F, H, W), next_c.reshape(B, F, H, W)


def _reference(x_nchw, h_nchw, c_nchw, weight_hwio, bias):
    """Pure-JAX f32 reference (NHWC conv) for correctness check."""
    x = jnp.transpose(x_nchw, (0, 2, 3, 1))
    h = jnp.transpose(h_nchw, (0, 2, 3, 1))
    c = jnp.transpose(c_nchw, (0, 2, 3, 1))
    combined = jnp.concatenate([x, h], axis=-1)
    A = lax.conv_general_dilated(
        combined, weight_hwio, window_strides=(1, 1), padding='SAME',
        dimension_numbers=('NHWC', 'HWIO', 'NHWC')) + bias
    ai, af, ao, ag = jnp.split(A, 4, axis=-1)
    i = jax.nn.sigmoid(ai)
    f = jax.nn.sigmoid(af)
    o = jax.nn.sigmoid(ao)
    g = jnp.tanh(ag)
    next_c = f * c + i * g
    next_h = o * jnp.tanh(next_c)
    return (jnp.transpose(next_h, (0, 3, 1, 2)),
            jnp.transpose(next_c, (0, 3, 1, 2)))


if __name__ == "__main__":
    # Module config: CLSTM_cell(shape=(16,16), input_chans=4, filter_size=3,
    # num_features=32).
    B, Cin, H, W = 2, 4, 16, 16
    F, FS = 32, 3
    C = Cin + F

    key = jax.random.PRNGKey(0)
    kx, kh, kc, kw, kb = jax.random.split(key, 5)

    x = jax.random.normal(kx, (B, Cin, H, W), dtype=jnp.float32)
    # init_hidden() gives zeros; use small random states to exercise the math.
    h0 = jax.random.normal(kh, (B, F, H, W), dtype=jnp.float32) * 0.1
    c0 = jax.random.normal(kc, (B, F, H, W), dtype=jnp.float32) * 0.1

    # PyTorch Conv2d default init: U(-1/sqrt(fan_in), 1/sqrt(fan_in)).
    fan_in = C * FS * FS
    bound = 1.0 / (fan_in ** 0.5)
    weight_hwio = jax.random.uniform(kw, (FS, FS, C, 4 * F),
                                     minval=-bound, maxval=bound,
                                     dtype=jnp.float32)
    bias = jax.random.uniform(kb, (4 * F,), minval=-bound, maxval=bound,
                              dtype=jnp.float32)

    next_h, next_c = clstm_cell_forward(x, h0, c0, weight_hwio, bias,
                                        filter_size=FS)
    jax.block_until_ready((next_h, next_c))

    ref_h, ref_c = _reference(x, h0, c0, weight_hwio, bias)
    # bf16 matmul operands + bf16 gate transcendentals (f32 accumulation /
    # state math) -> slightly loosened tolerances.
    assert jnp.allclose(next_h, ref_h, atol=3e-2, rtol=3e-2), \
        float(jnp.max(jnp.abs(next_h - ref_h)))
    assert jnp.allclose(next_c, ref_c, atol=3e-2, rtol=3e-2), \
        float(jnp.max(jnp.abs(next_c - ref_c)))
    assert next_h.shape == (B, F, H, W) and next_c.shape == (B, F, H, W)
    assert next_c.dtype == jnp.float32

    print("KERNEL_OK")
</pallas_src>

<mosaic_0001>
module attributes {stable_mosaic.version = 11 : i64} {
  func.func @_clstm_kernel(%arg0: i32, %arg1: i32, %arg2: memref<1x324x256xbf16, #tpu.memory_space<vmem>>, %arg3: memref<128x324xbf16, #tpu.memory_space<vmem>>, %arg4: memref<128x1xf32, #tpu.memory_space<vmem>>, %arg5: memref<1x32x256xf32, #tpu.memory_space<vmem>>, %arg6: memref<1x32x256xf32, #tpu.memory_space<vmem>>, %arg7: memref<1x32x256xf32, #tpu.memory_space<vmem>>) attributes {dimension_semantics = [#tpu.dimension_semantics<parallel>, #tpu.dimension_semantics<parallel>], iteration_bounds = array<i64: 2, 1>, scalar_prefetch = 0 : i64, scratch_operands = 0 : i64, tpu.core_type = #tpu.core_type<tc>, window_params = [{transform_indices = @transform_0, window_bounds = array<i64: 1, 324, 256>}, {pipeline_mode = #tpu.pipeline_mode<synchronous>, transform_indices = @transform_1, window_bounds = array<i64: 128, 324>}, {pipeline_mode = #tpu.pipeline_mode<synchronous>, transform_indices = @transform_2, window_bounds = array<i64: 128, 1>}, {transform_indices = @transform_3, window_bounds = array<i64: 1, 32, 256>}, {transform_indices = @transform_4, window_bounds = array<i64: 1, 32, 256>}, {transform_indices = @transform_5, window_bounds = array<i64: 1, 32, 256>}]} {
    %c0 = arith.constant 0 : index
    %c0_0 = arith.constant 0 : index
    %0 = vector.load %arg3[%c0, %c0_0] : memref<128x324xbf16, #tpu.memory_space<vmem>>, vector<128x324xbf16>
    %c0_1 = arith.constant 0 : index
    %c0_2 = arith.constant 0 : index
    %c0_3 = arith.constant 0 : index
    %1 = vector.load %arg2[%c0_1, %c0_2, %c0_3] : memref<1x324x256xbf16, #tpu.memory_space<vmem>>, vector<1x324x256xbf16>
    %2 = vector.shape_cast %1 : vector<1x324x256xbf16> to vector<324x256xbf16>
    %cst = arith.constant dense<0.000000e+00> : vector<128x256xf32>
    %3 = tpu.matmul %0, %2, %cst {dimension_numbers = #tpu.dot_dimension_numbers<[1], [0], [0], [1], [0, 0, 1, 1], [], []>} : vector<128x324xbf16>, vector<324x256xbf16>, vector<128x256xf32> -> vector<128x256xf32>
    %c0_4 = arith.constant 0 : index
    %c0_5 = arith.constant 0 : index
    %4 = vector.load %arg4[%c0_4, %c0_5] : memref<128x1xf32, #tpu.memory_space<vmem>>, vector<128x1xf32>
    %5 = vector.broadcast %4 : vector<128x1xf32> to vector<128x256xf32>
    %6 = arith.addf %3, %5 : vector<128x256xf32>
    %7 = arith.truncf %6 : vector<128x256xf32> to vector<128x256xbf16>
    %c0_6 = arith.constant 0 : index
    %c0_7 = arith.constant 0 : index
    %c0_8 = arith.constant 0 : index
    %8 = vector.load %arg5[%c0_6, %c0_7, %c0_8] : memref<1x32x256xf32, #tpu.memory_space<vmem>>, vector<1x32x256xf32>
    %9 = vector.shape_cast %8 : vector<1x32x256xf32> to vector<32x256xf32>
    %10 = vector.extract_strided_slice %7 {offsets = [0, 0], sizes = [32, 256], strides = [1, 1]} : vector<128x256xbf16> to vector<32x256xbf16>
    %cst_9 = arith.constant 5.000000e-01 : bf16
    %11 = vector.broadcast %cst_9 : bf16 to vector<32x256xbf16>
    %12 = arith.mulf %11, %10 : vector<32x256xbf16>
    %13 = math.tanh %12 : vector<32x256xbf16>
    %cst_10 = arith.constant 1.000000e+00 : bf16
    %14 = vector.broadcast %cst_10 : bf16 to vector<32x256xbf16>
    %15 = arith.addf %13, %14 : vector<32x256xbf16>
    %cst_11 = arith.constant 5.000000e-01 : bf16
    %16 = vector.broadcast %cst_11 : bf16 to vector<32x256xbf16>
    %17 = arith.mulf %16, %15 : vector<32x256xbf16>
    %18 = arith.extf %17 : vector<32x256xbf16> to vector<32x256xf32>
    %19 = vector.extract_strided_slice %7 {offsets = [32, 0], sizes = [32, 256], strides = [1, 1]} : vector<128x256xbf16> to vector<32x256xbf16>
    %cst_12 = arith.constant 5.000000e-01 : bf16
    %20 = vector.broadcast %cst_12 : bf16 to vector<32x256xbf16>
    %21 = arith.mulf %20, %19 : vector<32x256xbf16>
    %22 = math.tanh %21 : vector<32x256xbf16>
    %cst_13 = arith.constant 1.000000e+00 : bf16
    %23 = vector.broadcast %cst_13 : bf16 to vector<32x256xbf16>
    %24 = arith.addf %22, %23 : vector<32x256xbf16>
    %cst_14 = arith.constant 5.000000e-01 : bf16
    %25 = vector.broadcast %cst_14 : bf16 to vector<32x256xbf16>
    %26 = arith.mulf %25, %24 : vector<32x256xbf16>
    %27 = arith.extf %26 : vector<32x256xbf16> to vector<32x256xf32>
    %28 = vector.extract_strided_slice %7 {offsets = [96, 0], sizes = [32, 256], strides = [1, 1]} : vector<128x256xbf16> to vector<32x256xbf16>
    %29 = math.tanh %28 : vector<32x256xbf16>
    %30 = arith.extf %29 : vector<32x256xbf16> to vector<32x256xf32>
    %31 = arith.mulf %27, %9 : vector<32x256xf32>
    %32 = arith.mulf %18, %30 : vector<32x256xf32>
    %33 = arith.addf %31, %32 : vector<32x256xf32>
    %34 = vector.extract_strided_slice %7 {offsets = [64, 0], sizes = [32, 256], strides = [1, 1]} : vector<128x256xbf16> to vector<32x256xbf16>
    %cst_15 = arith.constant 5.000000e-01 : bf16
    %35 = vector.broadcast %cst_15 : bf16 to vector<32x256xbf16>
    %36 = arith.mulf %35, %34 : vector<32x256xbf16>
    %37 = math.tanh %36 : vector<32x256xbf16>
    %cst_16 = arith.constant 1.000000e+00 : bf16
    %38 = vector.broadcast %cst_16 : bf16 to vector<32x256xbf16>
    %39 = arith.addf %37, %38 : vector<32x256xbf16>
    %cst_17 = arith.constant 5.000000e-01 : bf16
    %40 = vector.broadcast %cst_17 : bf16 to vector<32x256xbf16>
    %41 = arith.mulf %40, %39 : vector<32x256xbf16>
    %42 = arith.extf %41 : vector<32x256xbf16> to vector<32x256xf32>
    %43 = math.tanh %33 : vector<32x256xf32>
    %44 = arith.mulf %42, %43 : vector<32x256xf32>
    %c0_18 = arith.constant 0 : index
    %c0_19 = arith.constant 0 : index
    %c0_20 = arith.constant 0 : index
    %45 = vector.load %arg7[%c0_18, %c0_19, %c0_20] : memref<1x32x256xf32, #tpu.memory_space<vmem>>, vector<1x32x256xf32>
    %46 = vector.shape_cast %45 : vector<1x32x256xf32> to vector<32x256xf32>
    %47 = vector.shape_cast %33 : vector<32x256xf32> to vector<1x32x256xf32>
    tpu.vector_store %arg7[%c0_18, %c0_19, %c0_20], %47 {strides = array<i32>} : memref<1x32x256xf32, #tpu.memory_space<vmem>>, vector<1x32x256xf32>,
    %c0_21 = arith.constant 0 : index
    %c0_22 = arith.constant 0 : index
    %c0_23 = arith.constant 0 : index
    %48 = vector.load %arg6[%c0_21, %c0_22, %c0_23] : memref<1x32x256xf32, #tpu.memory_space<vmem>>, vector<1x32x256xf32>
    %49 = vector.shape_cast %48 : vector<1x32x256xf32> to vector<32x256xf32>
    %50 = vector.shape_cast %44 : vector<32x256xf32> to vector<1x32x256xf32>
    tpu.vector_store %arg6[%c0_21, %c0_22, %c0_23], %50 {strides = array<i32>} : memref<1x32x256xf32, #tpu.memory_space<vmem>>, vector<1x32x256xf32>,
    return
  }
  func.func @transform_0(%arg0: i32, %arg1: i32) -> (i32, i32, i32) {
    %c0_i32 = arith.constant 0 : i32
    %c0_i32_0 = arith.constant 0 : i32
    return %arg0, %c0_i32, %arg1 : i32, i32, i32
  }
  func.func @transform_1(%arg0: i32, %arg1: i32) -> (i32, i32) {
    %c0_i32 = arith.constant 0 : i32
    %c0_i32_0 = arith.constant 0 : i32
    %c0_i32_1 = arith.constant 0 : i32
    return %c0_i32, %c0_i32_0 : i32, i32
  }
  func.func @transform_2(%arg0: i32, %arg1: i32) -> (i32, i32) {
    %c0_i32 = arith.constant 0 : i32
    %c0_i32_0 = arith.constant 0 : i32
    %c0_i32_1 = arith.constant 0 : i32
    return %c0_i32, %c0_i32_0 : i32, i32
  }
  func.func @transform_3(%arg0: i32, %arg1: i32) -> (i32, i32, i32) {
    %c0_i32 = arith.constant 0 : i32
    %c0_i32_0 = arith.constant 0 : i32
    return %arg0, %c0_i32, %arg1 : i32, i32, i32
  }
  func.func @transform_4(%arg0: i32, %arg1: i32) -> (i32, i32, i32) {
    %c0_i32 = arith.constant 0 : i32
    %c0_i32_0 = arith.constant 0 : i32
    return %arg0, %c0_i32, %arg1 : i32, i32, i32
  }
  func.func @transform_5(%arg0: i32, %arg1: i32) -> (i32, i32, i32) {
    %c0_i32 = arith.constant 0 : i32
    %c0_i32_0 = arith.constant 0 : i32
    return %arg0, %c0_i32, %arg1 : i32, i32, i32
  }
}

</mosaic_0001>

<bundles_post_ra>
// kernel: tpu_custom_call.1
= control target key start
LH: loop header
LB: loop body
LE: loop exit
PB: predicated region body
PF: predicated region fallthrough
CT: control target
= control target key end

     0   :  { %s3062_s0 = inlined_call_operand.vmem [shape: bf16[2,324,256], index: 0, kind: input, shape index: {}]   ;;  %s3063_s1 = inlined_call_operand.vmem [shape: bf16[128,324], index: 1, kind: input, shape index: {}]   ;;  %s3064_s2 = inlined_call_operand.vmem [shape: f32[128,1], index: 2, kind: input, shape index: {}]   ;;  %s3065_s3 = inlined_call_operand.vmem [shape: f32[2,32,256], index: 3, kind: input, shape index: {}]   ;;  %s3066_s4 = inlined_call_operand.hbm [shape: f32[2,32,256], index: 4, kind: output, shape index: {0}]   ;;  %s3067_s5 = inlined_call_operand.hbm [shape: f32[2,32,256], index: 5, kind: output, shape index: {1}]  }
   0x1   :  { %3068 = sst [smem:[#allocation8_spill]] %s3062_s0 }
   0x2   :  { %11 = vsyncpa [#allocation3], 0 }
   0x3   :  { %13 = vsyncpa [#allocation3 + $0x1], 0 }
   0x4   :  { %14 = vsyncpa [#allocation5], 0 }
   0x5   :  { %16 = vsyncpa [#allocation5 + $0x1], 0  ;;  %s2334_s18 = smov 0   ;;  %s2336_s19 = smov 0  }
   0x6   :  { %s2338_s20 = smov 0   ;;  %s2340_s21 = smov 0  }
   0x7   :  { %s2342_s22 = smov 0   ;;  %s2344_s23 = smov 0  }
   0x8 LB: > { %s1672_s24 = sadd.s32 4294967295, %s2299_s23   ;;  %s1673_s25 = sadd.s32 4294967294, %s2299_s23   ;;  %s2299_s23 = sphi %s2344_s23, %s22_s23   ;;  %s2295_s22 = sphi %s2342_s22, %s3076_s22   ;;  %s2291_s21 = sphi %s2340_s21, %s3075_s21   ;;  %s2287_s20 = sphi %s2338_s20, %s3074_s20   ;;  %s2283_s19 = sphi %s2336_s19, %s3073_s19   ;;  %s2279_s18 = sphi %s2334_s18, %s3072_s18  }
   0x9   : > { %s34_s26 = sadd.s32 1, %s2295_s22  ;;  %s141_s27 = sadd.s32 1, %s2287_s20 }
   0xa   : > { %p36_p0 = scmp.ge.s32.totalorder %s34_s26, 2  ;;  %p151_p1 = scmp.ne.s32.totalorder %s2287_s20, %s2283_s19 }
   0xb   : > { %p152_p2 = scmp.eq.s32.totalorder %s1672_s24, 1  ;;  %p157_p3 = scmp.ne.s32.totalorder %s2283_s19, %s2279_s18 }
   0xc   : > { %s3078_s26 = smov (%p36_p0, %s34_s26), 0  ;;  %p158_p5 = scmp.eq.s32.totalorder %s1673_s25, 1 }
   0xd   : > { %p2374_p4 = por %p152_p2, %p151_p1  ;;  %s136_s29 = ssub.s32 %s2295_s22, %s3078_s26 }
   0xe   : > { %p1676_p6 = scmp.ge.s32.totalorder %s2299_s23, 1  ;;  %p139_p7 = scmp.eq.s32.totalorder %s136_s29, 0 }
   0xf   : > { %p2381_p8 = por %p158_p5, %p157_p3  ;;  %p236_p9 = scmp.lt.s32.totalorder %s2299_s23, 3 }
  0x10   : > { %s2387_s6 = scalar_select %p139_p7, %s2287_s20, %s141_s27  }
  0x11   : > { %p237_p10 = pnand %p1676_p6, %p236_p9 }
  0x12   : > { %p283_p11 = scmp.lt.s32.totalorder (!%p237_p10), %s2291_s21, 1  ;;  %s3071_s0 = sld [smem:[#allocation8_spill]] (!%p237_p10) }
  0x13   : > { %240 = sbr.rel (%p237_p10) target bundleno = 436 (0x1b4), region = 36  ;;  %s2027_s13 = sshll.u32 (!%p237_p10), %s2291_s21, 6 }
  0x14   : > { %s1535_s16 = scalar_lea.hbm (!%p237_p10), %s3067_s5, %s2027_s13  ;;  %s1516_s27 = scalar_lea.hbm (!%p237_p10), %s3066_s4, %s2027_s13 }
  0x15   : > { %s1538_s24 = sshll.u32 (!%p237_p10), %s1535_s16, 4  ;;  %s1539_s24 = int_to_ptr.hbm [resolvable:$true] %s1538_s24 }
  0x18   : > { %s2391_s7 = scalar_select %p283_p11, %s2291_s21, 1  ;;  %v378_v0 = vld [vmem:[%s3064_s2] sm:$0xff]  ;;  %v2301_v4 = vmov 0   ;;  %vm824_vm0 = vcmask 1041408   ;;  %v379_v28 = vld [vmem:[%s3064_s2 + $0x8] sm:$0xff]  ;;  %v380_v34 = vld [vmem:[%s3064_s2 + $0x10] sm:$0xff] }
  0x19   : > { %2106 = vset.pattern.permute.xlu0 %v2301_v4  ;;  %2107 = vset.pattern.permute.xlu1 %v2301_v4  ;;  %v1692_v36 = vld [vmem:[%s3063_s1 + $0x8] sm:$0xf]  ;;  %v1965_v39 = vld [vmem:[%s3063_s1 + $0x10] sm:$0xf0]  ;;  %v1752_v43 = vld [vmem:[%s3063_s1 + $0x80] sm:$0xf] }
  0x1a   : > { %s2042_s8 = smul.u32 328, %s2391_s7  ;;  %396 = vperm.xlu0 %2106, %v378_v0   ;;  %2108 = vset.pattern.permute.xlu2 %v2301_v4  ;;  %v1980_v44 = vld [vmem:[%s3063_s1 + $0x88] sm:$0xf0]  ;;  %v384_v45 = vld [vmem:[%s3064_s2 + $0x30] sm:$0xff]  ;;  %v2457_v54 = vor.u32 %v1965_v39, %v1692_v36  ;;  %vm799_vm1 = vcmask 556032  }
  0x1b   : > { %406 = vperm.xlu1 %2107, %v380_v34   ;;  %v2459_v55 = vor.u32 %v1980_v44, %v1752_v43  ;;  %v1764_v39 = vld [vmem:[%s3063_s1 + $0x98] sm:$0xf] }
  0x1c   : > { %s2397_s11 = scalar_lea.vmem %s3071_s0, %s2042_s8  ;;  %s2943_s8 = sand.u32 1, %s2283_s19  }
  0x1d   : > { %v1836_v1 = vld [vmem:[%s2397_s11 + $0x70] sm:$0xf]  ;;  %v2002_v2 = vld [vmem:[%s2397_s11 + $0x74] sm:$0xf0]  ;;  %v2405_v3 = vld [vmem:[%s2397_s11 + $0x140] sm:$0x33] }
  0x1e   : > { %v1837_v5 = vor.u32 %v2002_v2, %v1836_v1  ;;  %v715_v6 = vunpack.c.l.b16 %v2405_v3  ;;  %v1828_v7 = vld [vmem:[%s2397_s11 + $0x60] sm:$0xf]  ;;  %v2000_v8 = vld [vmem:[%s2397_s11 + $0x64] sm:$0xf0]  ;;  %v1932_v11 = vld [vmem:[%s2397_s11 + $0x130] sm:$0xf]  ;;  %v716_v53 = vunpack.c.h.b16 %v2405_v3 }
  0x1f   : > { %v1829_v10 = vor.u32 %v2000_v8, %v1828_v7  ;;  %v2026_v12 = vld [vmem:[%s2397_s11 + $0x134] sm:$0xf0]  ;;  %v1820_v13 = vld [vmem:[%s2397_s11 + $0x50] sm:$0xf]  ;;  %v1924_v18 = vld [vmem:[%s2397_s11 + $0x120] sm:$0xf] }
  0x20   : > { %2029 = vmatpush.bf16.msra.mxu1 %v1837_v5  ;;  %v757_v9 = vpack.c.b16 %v715_v6, %v715_v6  ;;  %831 = vmatpush.bf16.msra.mxu0 %v1837_v5  ;;  %v1998_v14 = vld [vmem:[%s2397_s11 + $0x54] sm:$0xf0]  ;;  %v1933_v16 = vor.u32 %v2026_v12, %v1932_v11  ;;  %v2024_v19 = vld [vmem:[%s2397_s11 + $0x124] sm:$0xf0]  ;;  %v1812_v20 = vld [vmem:[%s2397_s11 + $0x40] sm:$0xf]  ;;  %v758_v1 = vpack.c.b16 %v716_v53, %v716_v53 }
  0x21   : > { %v1821_v17 = vor.u32 %v1998_v14, %v1820_v13  ;;  %v1996_v21 = vld [vmem:[%s2397_s11 + $0x44] sm:$0xf0]  ;;  %v1925_v22 = vor.u32 %v2024_v19, %v1924_v18  ;;  %v1916_v24 = vld [vmem:[%s2397_s11 + $0x110] sm:$0xf]  ;;  %v2022_v25 = vld [vmem:[%s2397_s11 + $0x114] sm:$0xf0] }
  0x22   : > { %v826_v15 = vsel %vm824_vm0, %v757_v9, 0  ;;  %v1813_v23 = vor.u32 %v1996_v21, %v1812_v20  ;;  %v1804_v26 = vld [vmem:[%s2397_s11 + $0x30] sm:$0xf]  ;;  %v1994_v27 = vld [vmem:[%s2397_s11 + $0x34] sm:$0xf0]  ;;  %401 = vperm.xlu0 %2106, %v379_v28   ;;  %v1917_v29 = vor.u32 %v2022_v25, %v1916_v24  ;;  %v387_v8 = vld [vmem:[%s3064_s2 + $0x48] sm:$0xff] }
  0x23   : > { %932 = vmatpush.bf16.msra.mxu2 %v826_v15  ;;  %2037 = vmatpush.bf16.msra.mxu3 %v826_v15  ;;  %v1908_v30 = vld [vmem:[%s2397_s11 + $0x100] sm:$0xf]  ;;  %v1805_v31 = vor.u32 %v1994_v27, %v1804_v26  ;;  %v2020_v32 = vld [vmem:[%s2397_s11 + $0x104] sm:$0xf0]  ;;  %v2017_v37 = vld [vmem:[%s2397_s11 + $0xf4] sm:$0xf] }
  0x24   : > { %2030 = vmatpush.bf16.msra.mxu1 %v1829_v10  ;;  %832 = vmatpush.bf16.msra.mxu0 %v1829_v10  ;;  %v1796_v33 = vld [vmem:[%s2397_s11 + $0x20] sm:$0xf]  ;;  %v1992_v35 = vld [vmem:[%s2397_s11 + $0x24] sm:$0xf0]  ;;  %v1902_v38 = vld [vmem:[%s2397_s11 + $0xf8] sm:$0xf0]  ;;  %v1909_v42 = vor.u32 %v2020_v32, %v1908_v30 }
  0x25   : > { %v2001_v40 = vld [vmem:[%s2397_s11 + $0x74] sm:$0xf]  ;;  %v1838_v41 = vld [vmem:[%s2397_s11 + $0x78] sm:$0xf0]  ;;  %v1797_v46 = vor.u32 %v1992_v35, %v1796_v33  ;;  %v1905_v47 = vor.u32 %v2017_v37, %v1902_v38  ;;  %v1788_v48 = vld [vmem:[%s2397_s11 + $0x10] sm:$0xf] }
  0x26   : > { %v1990_v49 = vld [vmem:[%s2397_s11 + $0x14] sm:$0xf0]  ;;  %v2015_v50 = vld [vmem:[%s2397_s11 + $0xe4] sm:$0xf]  ;;  %v1894_v51 = vld [vmem:[%s2397_s11 + $0xe8] sm:$0xf0]  ;;  %v1841_v52 = vor.u32 %v2001_v40, %v1838_v41 }
  0x27   : > { %933 = vmatpush.bf16.msra.mxu2 %v1933_v16  ;;  %2038 = vmatpush.bf16.msra.mxu3 %v1933_v16  ;;  %v1999_v56 = vld [vmem:[%s2397_s11 + $0x64] sm:$0xf]  ;;  %v1830_v57 = vld [vmem:[%s2397_s11 + $0x68] sm:$0xf0]  ;;  %v1789_v58 = vor.u32 %v1990_v49, %v1788_v48  ;;  %v1780_v59 = vld [vmem:[%s2397_s11] sm:$0xf]  ;;  %v1897_v60 = vor.u32 %v2015_v50, %v1894_v51 }
  0x28   : > { %2031 = vmatpush.bf16.msra.mxu1 %v1821_v17  ;;  %833 = vmatpush.bf16.msra.mxu0 %v1821_v17  ;;  %v1988_v61 = vld [vmem:[%s2397_s11 + $0x4] sm:$0xf0]  ;;  %v2013_v62 = vld [vmem:[%s2397_s11 + $0xd4] sm:$0xf]  ;;  %v1886_v63 = vld [vmem:[%s2397_s11 + $0xd8] sm:$0xf0]  ;;  %v1833_v0 = vor.u32 %v1999_v56, %v1830_v57 }
  0x29   : > { %v1732_v2 = vld [vmem:[%s3063_s1 + $0x60] sm:$0xf]  ;;  %v1900_v3 = vld [vmem:[%s2397_s11 + $0xf0] sm:$0xf]  ;;  %v2018_v4 = vld [vmem:[%s2397_s11 + $0xf4] sm:$0xf0]  ;;  %v1781_v9 = vor.u32 %v1988_v61, %v1780_v59  ;;  %v1889_v13 = vor.u32 %v2013_v62, %v1886_v63 }
  0x2a   : > { %426 = vperm.xlu0 %2106, %v384_v45   ;;  %v381_v5 = vld [vmem:[%s3064_s2 + $0x18] sm:$0xff]  ;;  %v1997_v6 = vld [vmem:[%s2397_s11 + $0x54] sm:$0xf]  ;;  %v1976_v10 = vld [vmem:[%s3063_s1 + $0x68] sm:$0xf0]  ;;  %v1901_v14 = vor.u32 %v2018_v4, %v1900_v3  ;;  %v829_v15 = vsel %vm824_vm0, %v758_v1, 0 }
  0x2b   : > { %934 = vmatpush.bf16.msra.mxu2 %v1925_v22  ;;  %2039 = vmatpush.bf16.msra.mxu3 %v1925_v22  ;;  %v1822_v7 = vld [vmem:[%s2397_s11 + $0x58] sm:$0xf0]  ;;  %v1684_v11 = vld [vmem:[%s3063_s1] sm:$0xf]  ;;  %v1964_v12 = vld [vmem:[%s3063_s1 + $0x8] sm:$0xf0] }
  0x2c   : > { %2032 = vmatpush.bf16.msra.mxu1 %v1813_v23  ;;  %834 = vmatpush.bf16.msra.mxu0 %v1813_v23  ;;  %v2011_v16 = vld [vmem:[%s2397_s11 + $0xc4] sm:$0xf]  ;;  %v1878_v17 = vld [vmem:[%s2397_s11 + $0xc8] sm:$0xf0]  ;;  %v1825_v19 = vor.u32 %v1997_v6, %v1822_v7  ;;  %v1892_v21 = vld [vmem:[%s2397_s11 + $0xe0] sm:$0xf]  ;;  %v2502_v23 = vor.u32 %v1976_v10, %v1732_v2  ;;  %v2507_v27 = vor.u32 %v1964_v12, %v1684_v11 }
  0x2d   : > { %411 = vperm.xlu1 %2107, %v381_v5   ;;  %v382_v18 = vld [vmem:[%s3064_s2 + $0x20] sm:$0xff]  ;;  %v2016_v22 = vld [vmem:[%s2397_s11 + $0xe4] sm:$0xf0]  ;;  %v1814_v24 = vld [vmem:[%s2397_s11 + $0x48] sm:$0xf0]  ;;  %v1881_v28 = vor.u32 %v2011_v16, %v1878_v17  ;;  %s1677_s9 = sshll.u32 %s2943_s8, 6 }
  0x2e   : > { %v1995_v20 = vld [vmem:[%s2397_s11 + $0x44] sm:$0xf]  ;;  %416 = vperm.xlu2 %2108, %v382_v18   ;;  %v2025_v25 = vld [vmem:[%s2397_s11 + $0x134] sm:$0xf]  ;;  %v1934_v26 = vld [vmem:[%s2397_s11 + $0x138] sm:$0xf0]  ;;  %v1893_v30 = vor.u32 %v2016_v22, %v1892_v21 }
  0x2f   : > { %935 = vmatpush.bf16.msra.mxu2 %v1917_v29  ;;  %2040 = vmatpush.bf16.msra.mxu3 %v1917_v29  ;;  %v385_v29 = vld [vmem:[%s3064_s2 + $0x38] sm:$0xff]  ;;  %v1704_v33 = vld [vmem:[%s3063_s1 + $0x20] sm:$0xf]  ;;  %v1817_v34 = vor.u32 %v1995_v20, %v1814_v24  ;;  %v1937_v35 = vor.u32 %v2025_v25, %v1934_v26  ;;  %v1884_v36 = vld [vmem:[%s2397_s11 + $0xd0] sm:$0xf]  ;;  %s2961_s10 = scalar_lea.vmem [#allocation4], %s1677_s9 }
  0x30   : > { %2033 = vmatpush.bf16.msra.mxu1 %v1805_v31  ;;  %835 = vmatpush.bf16.msra.mxu0 %v1805_v31  ;;  %v2009_v31 = vld [vmem:[%s2397_s11 + $0xb4] sm:$0xf]  ;;  %v1870_v32 = vld [vmem:[%s2397_s11 + $0xb8] sm:$0xf0]  ;;  %v2014_v37 = vld [vmem:[%s2397_s11 + $0xd4] sm:$0xf0] }
  0x31   : > { %v1968_v38 = vld [vmem:[%s3063_s1 + $0x28] sm:$0xf0]  ;;  %v1983_v40 = vld [vmem:[%s3063_s1 + $0xa0] sm:$0xf0]  ;;  %v1993_v41 = vld [vmem:[%s2397_s11 + $0x34] sm:$0xf]  ;;  %v1873_v43 = vor.u32 %v2009_v31, %v1870_v32  ;;  %v1885_v44 = vor.u32 %v2014_v37, %v1884_v36 }
  0x32   : > { %441 = vperm.xlu0 %2106, %v387_v8   ;;  %v2532_v45 = vor.u32 %v1968_v38, %v1704_v33  ;;  %v2012_v48 = vld [vmem:[%s2397_s11 + $0xc4] sm:$0xf0]  ;;  %v1991_v50 = vld [vmem:[%s2397_s11 + $0x24] sm:$0xf]  ;;  %v1798_v51 = vld [vmem:[%s2397_s11 + $0x28] sm:$0xf0] }
  0x33   : > { %936 = vmatpush.bf16.msra.mxu2 %v1909_v42  ;;  %2041 = vmatpush.bf16.msra.mxu3 %v1909_v42  ;;  %v1806_v42 = vld [vmem:[%s2397_s11 + $0x38] sm:$0xf0]  ;;  %v1744_v53 = vld [vmem:[%s3063_s1 + $0x78] sm:$0xf]  ;;  %v1979_v56 = vld [vmem:[%s3063_s1 + $0x80] sm:$0xf0]  ;;  %v1801_v61 = vor.u32 %v1991_v50, %v1798_v51 }
  0x34   : > { %2034 = vmatpush.bf16.msra.mxu1 %v1797_v46  ;;  %836 = vmatpush.bf16.msra.mxu0 %v1797_v46  ;;  %v2534_v46 = vor.u32 %v1983_v40, %v1764_v39  ;;  %v1809_v49 = vor.u32 %v1993_v41, %v1806_v42  ;;  %v1989_v57 = vld [vmem:[%s2397_s11 + $0x14] sm:$0xf]  ;;  %v1862_v62 = vld [vmem:[%s2397_s11 + $0xa8] sm:$0xf0]  ;;  %v2023_v63 = vld [vmem:[%s2397_s11 + $0x124] sm:$0xf] }
  0x35   : > { %431 = vperm.xlu1 %2107, %v385_v29   ;;  %v388_v59 = vld [vmem:[%s3064_s2 + $0x50] sm:$0xff]  ;;  %v1790_v1 = vld [vmem:[%s2397_s11 + $0x18] sm:$0xf0]  ;;  %v2010_v5 = vld [vmem:[%s2397_s11 + $0xb4] sm:$0xf0]  ;;  %s2972_s12 = scalar_lea.vmem [#allocation2], %s1677_s9 }
  0x36   : > { %1938 = vmatmul.msk.bf16.vlgmr.msra.gmra.mxu2 %vm799_vm1, %v2457_v54  ;;  %1943 = vmatmul.msk.bf16.vlgmr.msra.gmra.mxu3 %vm799_vm1, %v2459_v55  ;;  %v1868_v4 = vld [vmem:[%s2397_s11 + $0xb0] sm:$0xf]  ;;  %v1696_v6 = vld [vmem:[%s3063_s1 + $0x18] sm:$0xf]  ;;  %v1967_v7 = vld [vmem:[%s3063_s1 + $0x20] sm:$0xf0]  ;;  %v1793_v10 = vor.u32 %v1989_v57, %v1790_v1 }
  0x37   : > { %1027 = vmatpush.bf16.msrb.mxu2 %v1905_v47  ;;  %978 = vmatpush.bf16.msrb.mxu3 %v1841_v52  ;;  %v1876_v47 = vld [vmem:[%s2397_s11 + $0xc0] sm:$0xf]  ;;  %v1869_v8 = vor.u32 %v2010_v5, %v1868_v4  ;;  %v2572_v11 = vor.u32 %v1967_v7, %v1696_v6  ;;  %v1987_v12 = vld [vmem:[%s2397_s11 + $0x4] sm:$0xf]  ;;  %v1776_v17 = vld [vmem:[%s3063_s1 + $0xb0] sm:$0xf] }
  0x38   : > { %2035 = vmatpush.bf16.msra.mxu1 %v1789_v58  ;;  %837 = vmatpush.bf16.msra.mxu0 %v1789_v58  ;;  %v1877_v52 = vor.u32 %v2012_v48, %v1876_v47  ;;  %v383_v58 = vld [vmem:[%s3064_s2 + $0x28] sm:$0xff]  ;;  %v1971_v16 = vld [vmem:[%s3063_s1 + $0x40] sm:$0xf0]  ;;  %v1986_v18 = vld [vmem:[%s3063_s1 + $0xb8] sm:$0xf0]  ;;  %s1536_s17 = sshll.u32 %s2961_s10, 4  ;;  %s1537_s17 = int_to_ptr.vmem [resolvable:$true] %s1536_s17 }
  0x39   : > { %421 = vperm.xlu2 %2108, %v383_v58   ;;  %v2005_v20 = vld [vmem:[%s2397_s11 + $0x94] sm:$0xf]  ;;  %v1854_v21 = vld [vmem:[%s2397_s11 + $0x98] sm:$0xf0]  ;;  %v1860_v22 = vld [vmem:[%s2397_s11 + $0xa0] sm:$0xf]  ;;  %v2601_v32 = vor.u32 %v1986_v18, %v1776_v17 }
  0x3a   : > { %v1857_v24 = vor.u32 %v2005_v20, %v1854_v21  ;;  %v2008_v25 = vld [vmem:[%s2397_s11 + $0xa4] sm:$0xf0]  ;;  %v2021_v26 = vld [vmem:[%s2397_s11 + $0x114] sm:$0xf]  ;;  %v1852_v33 = vld [vmem:[%s2397_s11 + $0x90] sm:$0xf] }
  0x3b   : > { %1028 = vmatpush.bf16.msrb.mxu2 %v1897_v60  ;;  %979 = vmatpush.bf16.msrb.mxu3 %v1833_v0  ;;  %v2007_v60 = vld [vmem:[%s2397_s11 + $0xa4] sm:$0xf]  ;;  %v1926_v0 = vld [vmem:[%s2397_s11 + $0x128] sm:$0xf0]  ;;  %v1861_v29 = vor.u32 %v2008_v25, %v1860_v22  ;;  %v1844_v38 = vld [vmem:[%s2397_s11 + $0x80] sm:$0xf] }
  0x3c   : > { %2036 = vmatpush.bf16.msra.mxu1 %v1781_v9  ;;  %838 = vmatpush.bf16.msra.mxu0 %v1781_v9  ;;  %v1865_v2 = vor.u32 %v2007_v60, %v1862_v62  ;;  %v1929_v3 = vor.u32 %v2023_v63, %v1926_v0  ;;  %v2570_v9 = vor.u32 %v1979_v56, %v1744_v53  ;;  %v390_v36 = vld [vmem:[%s3064_s2 + $0x60] sm:$0xff]  ;;  %v2004_v39 = vld [vmem:[%s2397_s11 + $0x84] sm:$0xf0]  ;;  %v1846_v41 = vld [vmem:[%s2397_s11 + $0x88] sm:$0xf0]  ;;  %s1503_s29 = scalar_lea.sflag [#allocation5], %s2943_s8 }
  0x3d   : > { %446 = vperm.xlu1 %2107, %v388_v59   ;;  %456 = vperm.xlu0 %2106, %v390_v36   ;;  %v2003_v40 = vld [vmem:[%s2397_s11 + $0x84] sm:$0xf]  ;;  %v1756_v42 = vld [vmem:[%s3063_s1 + $0x90] sm:$0xf]  ;;  %v389_v48 = vld [vmem:[%s3064_s2 + $0x58] sm:$0xff] }
  0x3e   : > { %v1849_v47 = vor.u32 %v2003_v40, %v1846_v41  ;;  %v1970_v50 = vld [vmem:[%s3063_s1 + $0x38] sm:$0xf0]  ;;  %v1728_v53 = vld [vmem:[%s3063_s1 + $0x50] sm:$0xf]  ;;  %v2019_v57 = vld [vmem:[%s2397_s11 + $0x104] sm:$0xf] }
  0x3f   : > { %1029 = vmatpush.bf16.msrb.mxu2 %v1889_v13  ;;  %980 = vmatpush.bf16.msrb.mxu3 %v1825_v19  ;;  %v1782_v13 = vld [vmem:[%s2397_s11 + $0x8] sm:$0xf0]  ;;  %v1974_v56 = vld [vmem:[%s3063_s1 + $0x58] sm:$0xf0]  ;;  %v1768_v62 = vld [vmem:[%s3063_s1 + $0xa8] sm:$0xf] }
  0x40   : > { %880 = vmatpush.bf16.msrb.mxu1 %v1901_v14  ;;  %1079 = vmatpush.bf16.msrb.mxu0 %v829_v15  ;;  %v1716_v14 = vld [vmem:[%s3063_s1 + $0x38] sm:$0xf]  ;;  %v386_v15 = vld [vmem:[%s3064_s2 + $0x40] sm:$0xff]  ;;  %v1785_v19 = vor.u32 %v1987_v12, %v1782_v13  ;;  %v1910_v58 = vld [vmem:[%s2397_s11 + $0x108] sm:$0xf0]  ;;  %v1729_v60 = vor.u32 %v1974_v56, %v1728_v53 }
  0x41   : > { %859 = vmatmul.bf16.vlgmr.msra.gmra.mxu1 %v2502_v23  ;;  %839 = vmatmul.bf16.vlgmr.msra.gmra.mxu0 %v2507_v27  ;;  %v2599_v31 = vor.u32 %v1971_v16, %v1716_v14  ;;  %v1913_v59 = vor.u32 %v2019_v57, %v1910_v58  ;;  %v1985_v63 = vld [vmem:[%s3063_s1 + $0xb0] sm:$0xf0]  ;;  %v1720_v0 = vld [vmem:[%s3063_s1 + $0x48] sm:$0xf]  ;;  %v1963_v7 = vld [vmem:[%s3063_s1 + $0x4] sm:$0xf] }
  0x42   : > { %436 = vperm.xlu2 %2108, %v386_v15   ;;  %v2662_v1 = vor.u32 %v1985_v63, %v1768_v62  ;;  %v1977_v4 = vld [vmem:[%s3063_s1 + $0x70] sm:$0xf0]  ;;  %v1698_v12 = vld [vmem:[%s3063_s1 + $0x24] sm:$0xf0]  ;;  %v1710_v14 = vld [vmem:[%s3063_s1 + $0x3c] sm:$0xf0] }
  0x43   : > { %1030 = vmatpush.bf16.msrb.mxu2 %v1881_v28  ;;  %981 = vmatpush.bf16.msrb.mxu3 %v1817_v34  ;;  %v1918_v28 = vld [vmem:[%s2397_s11 + $0x118] sm:$0xf0]  ;;  %v2006_v34 = vld [vmem:[%s2397_s11 + $0x94] sm:$0xf0]  ;;  %v392_v6 = vld [vmem:[%s3064_s2 + $0x70] sm:$0xff]  ;;  %s1962_s11 = sshll.u32 %s2391_s7, 6 }
  0x44   : > { %881 = vmatpush.bf16.msrb.mxu1 %v1893_v30  ;;  %1080 = vmatpush.bf16.msrb.mxu0 %v1937_v35  ;;  %v1921_v30 = vor.u32 %v2021_v26, %v1918_v28  ;;  %v391_v35 = vld [vmem:[%s3064_s2 + $0x68] sm:$0xff]  ;;  %v1853_v37 = vor.u32 %v2006_v34, %v1852_v33  ;;  %v1722_v16 = vld [vmem:[%s3063_s1 + $0x54] sm:$0xf0]  ;;  %v1734_v18 = vld [vmem:[%s3063_s1 + $0x6c] sm:$0xf0]  ;;  %s2920_s7 = scalar_lea.vmem %s3065_s3, %s1962_s11 }
  0x45   : > { %461 = vperm.xlu1 %2107, %v391_v35   ;;  %v1981_v41 = vld [vmem:[%s3063_s1 + $0x94] sm:$0xf]  ;;  %v1984_v53 = vld [vmem:[%s3063_s1 + $0xac] sm:$0xf]  ;;  %v1770_v56 = vld [vmem:[%s3063_s1 + $0xb4] sm:$0xf0] }
  0x46   : > { %1939 = vmatmul.msk.bf16.gmra.mxu2 %vm799_vm1, %v2532_v45  ;;  %1944 = vmatmul.msk.bf16.gmra.mxu3 %vm799_vm1, %v2534_v46  ;;  %v1773_v58 = vor.u32 %v1984_v53, %v1770_v56 }
  0x47   : > { %1031 = vmatpush.bf16.msrb.mxu2 %v1873_v43  ;;  %982 = vmatpush.bf16.msrb.mxu3 %v1809_v49  ;;  %v1982_v43 = vld [vmem:[%s3063_s1 + $0x98] sm:$0xf0]  ;;  %v1708_v49 = vld [vmem:[%s3063_s1 + $0x30] sm:$0xf] }
  0x48   : > { %882 = vmatpush.bf16.msrb.mxu1 %v1885_v44  ;;  %1081 = vmatpush.bf16.msrb.mxu0 %v1929_v3  ;;  %v1845_v44 = vor.u32 %v2004_v39, %v1844_v38  ;;  %v2634_v51 = vor.u32 %v1982_v43, %v1756_v42  ;;  %v1740_v3 = vld [vmem:[%s3063_s1 + $0x68] sm:$0xf]  ;;  %v1758_v42 = vld [vmem:[%s3063_s1 + $0x9c] sm:$0xf0] }
  0x49   : > { %v1741_v5 = vor.u32 %v1977_v4, %v1740_v3 }
  0x4a   : > { %451 = vperm.xlu2 %2108, %v389_v48  }
  0x4b   : > { %1032 = vmatpush.bf16.msrb.mxu2 %v1865_v2  ;;  %983 = vmatpush.bf16.msrb.mxu3 %v1801_v61  ;;  %v393_v61 = vld [vmem:[%s3064_s2 + $0x78] sm:$0xff] }
  0x4c   : > { %883 = vmatpush.bf16.msrb.mxu1 %v1877_v52  ;;  %1082 = vmatpush.bf16.msrb.mxu0 %v1921_v30  ;;  %v1709_v52 = vor.u32 %v1970_v50, %v1708_v49  ;;  %v1746_v30 = vld [vmem:[%s3063_s1 + $0x84] sm:$0xf0] }
  0x4d   : > { %471 = vperm.xlu0 %2106, %v393_v61  }
  0x4f   : > { %984 = vmatpush.bf16.msrb.mxu3 %v1793_v10  ;;  %1033 = vmatpush.bf16.msrb.mxu2 %v1857_v24 }
  0x50   : > { %884 = vmatpush.bf16.msrb.mxu1 %v1869_v8  ;;  %1083 = vmatpush.bf16.msrb.mxu0 %v1913_v59  ;;  %v1686_v8 = vld [vmem:[%s3063_s1 + $0xc] sm:$0xf0] }
  0x51   : > { %864 = vmatmul.bf16.gmra.mxu1 %v2570_v9  ;;  %844 = vmatmul.bf16.gmra.mxu0 %v2572_v11  ;;  %v1689_v10 = vor.u32 %v1963_v7, %v1686_v8 }
  0x52   : > { %466 = vperm.xlu2 %2108, %v392_v6  }
  0x53   : > { %985 = vmatpush.bf16.msrb.mxu3 %v1785_v19  ;;  %1034 = vmatpush.bf16.msrb.mxu2 %v1849_v47 }
  0x54   : > { %885 = vmatpush.bf16.msrb.mxu1 %v1861_v29  ;;  %v1978_v29 = vld [vmem:[%s3063_s1 + $0x7c] sm:$0xf] }
  0x55   : > { %v1749_v34 = vor.u32 %v1978_v29, %v1746_v30 }
  0x56   : > { %1940 = vmatmul.msk.bf16.gmra.mxu2 %vm799_vm1, %v2599_v31  ;;  %1945 = vmatmul.msk.bf16.gmra.mxu3 %vm799_vm1, %v2601_v32 }
  0x58   : > { %886 = vmatpush.bf16.msrb.mxu1 %v1853_v37 }
  0x5c   : > { %887 = vmatpush.bf16.msrb.mxu1 %v1845_v44  ;;  %v1761_v44 = vor.u32 %v1981_v41, %v1758_v42 }
  0x61   : > { %869 = vmatmul.bf16.gmra.mxu1 %v2634_v51  ;;  %849 = vmatmul.bf16.gmra.mxu0 %v1709_v52 }
  0x66   : > { %1941 = vmatmul.msk.bf16.gmra.mxu2 %vm799_vm1, %v1729_v60  ;;  %986 = vmatmul.bf16.vlgmr.msrb.gmra.mxu3 %v2507_v27  ;;  %v1973_v27 = vld [vmem:[%s3063_s1 + $0x50] sm:$0xf0] }
  0x67   : > { %v1721_v2 = vor.u32 %v1973_v27, %v1720_v0 }
  0x71   : > { %874 = vmatmul.bf16.gmra.mxu1 %v2662_v1  ;;  %854 = vmatmul.bf16.gmra.mxu0 %v1721_v2 }
  0x76   : > { %1942 = vmatmul.msk.bf16.gmra.mxu2 %vm799_vm1, %v1741_v5  ;;  %991 = vmatmul.bf16.gmra.mxu3 %v2572_v11  ;;  %v1966_v11 = vld [vmem:[%s3063_s1 + $0x1c] sm:$0xf] }
  0x77   : > { %v1701_v13 = vor.u32 %v1966_v11, %v1698_v12 }
  0x81   : > { %888 = vmatmul.bf16.vlgmr.msrb.gmra.mxu1 %v1689_v10  ;;  %1946 = vmatmul.msk.bf16.vlgmr.msrb.gmra.mxu0 %vm799_vm1, %v2457_v54  ;;  %v1969_v54 = vld [vmem:[%s3063_s1 + $0x34] sm:$0xf] }
  0x82   : > { %v1713_v15 = vor.u32 %v1969_v54, %v1710_v14 }
  0x86   : > { %996 = vmatmul.bf16.gmra.mxu3 %v1709_v52  ;;  %1035 = vmatmul.bf16.vlgmr.msrb.gmra.mxu2 %v1689_v10 }
  0x8c   : > { %v397_v27 = vpop.permute.xlu0 %396 }
  0x91   : > { %893 = vmatmul.bf16.gmra.mxu1 %v1701_v13  ;;  %1947 = vmatmul.msk.bf16.gmra.mxu0 %vm799_vm1, %v2532_v45  ;;  %v1972_v45 = vld [vmem:[%s3063_s1 + $0x4c] sm:$0xf] }
  0x92   : > { %v1725_v17 = vor.u32 %v1972_v45, %v1722_v16  ;;  %v407_v45 = vpop.permute.xlu1 %406 }
  0x96   : > { %1001 = vmatmul.bf16.gmra.mxu3 %v1721_v2  ;;  %1040 = vmatmul.bf16.gmra.mxu2 %v1701_v13 }
  0x9f   : > { %v412_v42 = vpop.permute.xlu1 %411 }
  0xa1   : > { %898 = vmatmul.bf16.gmra.mxu1 %v1713_v15  ;;  %1948 = vmatmul.msk.bf16.gmra.mxu0 %vm799_vm1, %v2599_v31 }
  0xa6   : > { %1006 = vmatmul.bf16.gmra.mxu3 %v2502_v23  ;;  %1045 = vmatmul.bf16.gmra.mxu2 %v1713_v15  ;;  %v1975_v23 = vld [vmem:[%s3063_s1 + $0x64] sm:$0xf] }
  0xa7   : > { %v1737_v21 = vor.u32 %v1975_v23, %v1734_v18 }
  0xb1   : > { %903 = vmatmul.bf16.gmra.mxu1 %v1725_v17  ;;  %1949 = vmatmul.msk.bf16.gmra.mxu0 %vm799_vm1, %v1729_v60 }
  0xb6   : > { %1011 = vmatmul.bf16.gmra.mxu3 %v2570_v9  ;;  %1050 = vmatmul.bf16.gmra.mxu2 %v1725_v17 }
  0xb9   : > { %v2715_v19 = vpop.f32.mrf.mxu2  ;;  %v2717_v20 = vpop.f32.mrf.mxu3 }
  0xbe   : > { %v2719_v22 = vpop.f32.mrf.mxu1  ;;  %v840_v24 = vpop.f32.mrf.mxu0 }
  0xbf   : > { %v841_v2 = vadd.f32 %v840_v24, %v397_v27 }
  0xc1   : > { %908 = vmatmul.bf16.gmra.mxu1 %v1737_v21  ;;  %1950 = vmatmul.msk.bf16.gmra.mxu0 %vm799_vm1, %v1741_v5  ;;  %v2722_v9 = vpop.f32.mrf.mxu2  ;;  %v2724_v25 = vpop.f32.mrf.mxu3 }
  0xc6   : > { %v2726_v26 = vpop.f32.mrf.mxu1  ;;  %v842_v28 = vpop.f32.mrf.mxu0  ;;  %1016 = vmatmul.bf16.gmra.mxu3 %v2634_v51  ;;  %1055 = vmatmul.bf16.gmra.mxu2 %v1737_v21 }
  0xc9   : > { %v2735_v31 = vpop.f32.mrf.mxu2  ;;  %v2737_v33 = vpop.f32.mrf.mxu3 }
  0xce   : > { %v2739_v35 = vpop.f32.mrf.mxu1  ;;  %v845_v36 = vpop.f32.mrf.mxu0 }
  0xcf   : > { %v846_v23 = vadd.f32 %v845_v36, %v407_v45 }
  0xd1   : > { %913 = vmatmul.bf16.gmra.mxu1 %v1749_v34  ;;  %1951 = vmatmul.msk.bf16.gmra.mxu0 %vm799_vm1, %v2459_v55  ;;  %v2743_v37 = vpop.f32.mrf.mxu2  ;;  %v2745_v38 = vpop.f32.mrf.mxu3 }
  0xd6   : > { %v2747_v39 = vpop.f32.mrf.mxu1  ;;  %v2749_v40 = vpop.f32.mrf.mxu0  ;;  %1021 = vmatmul.bf16.gmra.mxu3 %v2662_v1  ;;  %1060 = vmatmul.bf16.gmra.mxu2 %v1749_v34 }
  0xd7   : > { %v848_v53 = vadd.f32 %v2749_v40, %v412_v42 }
  0xd9   : > { %v2758_v55 = vpop.f32.mrf.mxu2  ;;  %v2760_v43 = vpop.f32.mrf.mxu3 }
  0xde   : > { %v2762_v47 = vpop.f32.mrf.mxu1  ;;  %v2764_v48 = vpop.f32.mrf.mxu0 }
  0xe1   : > { %918 = vmatmul.bf16.gmra.mxu1 %v1761_v44  ;;  %1952 = vmatmul.msk.bf16.gmra.mxu0 %vm799_vm1, %v2534_v46  ;;  %v2768_v49 = vpop.f32.mrf.mxu2  ;;  %v2770_v50 = vpop.f32.mrf.mxu3 }
  0xe6   : > { %v2772_v51 = vpop.f32.mrf.mxu1  ;;  %v2774_v52 = vpop.f32.mrf.mxu0  ;;  %1065 = vmatmul.bf16.gmra.mxu2 %v1761_v44 }
  0xe9   : > { %v2782_v57 = vpop.f32.mrf.mxu2  ;;  %v987_v46 = vpop.f32.mrf.mxu3 }
  0xea   : > { %v988_v14 = vadd.f32 %v987_v46, %v397_v27 }
  0xee   : > { %v2784_v59 = vpop.f32.mrf.mxu1  ;;  %v2786_v60 = vpop.f32.mrf.mxu0 }
  0xf1   : > { %923 = vmatmul.bf16.gmra.mxu1 %v1773_v58  ;;  %1953 = vmatmul.msk.bf16.gmra.mxu0 %vm799_vm1, %v2601_v32  ;;  %v2790_v61 = vpop.f32.mrf.mxu2  ;;  %v989_v62 = vpop.f32.mrf.mxu3 }
  0xf2   : > { %v402_v32 = vpop.permute.xlu0 %401 }
  0xf3   : > { %v843_v10 = vadd.f32 %v842_v28, %v402_v32  ;;  %v990_v28 = vadd.f32 %v989_v62, %v402_v32 }
  0xf6   : > { %v2792_v63 = vpop.f32.mrf.mxu1  ;;  %v2794_v0 = vpop.f32.mrf.mxu0  ;;  %1070 = vmatmul.bf16.gmra.mxu2 %v1773_v58 }
  0xf9   : > { %v2796_v1 = vpop.f32.mrf.mxu2  ;;  %v992_v3 = vpop.f32.mrf.mxu3 }
  0xfa   : > { %v993_v27 = vadd.f32 %v992_v3, %v407_v45 }
  0xfe   : > { %v889_v4 = vpop.f32.mrf.mxu1  ;;  %v1085_v6 = vpop.f32.mrf.mxu0 }
  0xff   : > { %v890_v5 = vadd.f32 %v889_v4, %v841_v2  ;;  %v417_v4 = vpop.permute.xlu2 %416 }
 0x101   : > { %v939_v7 = vadd.f32 %v2715_v19, %v890_v5  ;;  %v2799_v8 = vpop.f32.mrf.mxu2  ;;  %v994_v12 = vpop.f32.mrf.mxu3 }
 0x106   : > { %v891_v11 = vpop.f32.mrf.mxu1  ;;  %v1087_v54 = vpop.f32.mrf.mxu0 }
 0x107   : > { %v892_v13 = vadd.f32 %v891_v11, %v843_v10 }
 0x109   : > { %v941_v15 = vadd.f32 %v2722_v9, %v892_v13  ;;  %v1036_v16 = vpop.f32.mrf.mxu2  ;;  %v997_v30 = vpop.f32.mrf.mxu3 }
 0x10a   : > { %v1037_v17 = vadd.f32 %v1036_v16, %v988_v14  ;;  %v422_v16 = vpop.permute.xlu2 %421 }
 0x10b   : > { %v853_v3 = vadd.f32 %v2774_v52, %v422_v16 }
 0x10c   : > { %v1086_v18 = vadd.f32 %v1085_v6, %v1037_v17 }
 0x10e   : > { %v894_v21 = vpop.f32.mrf.mxu1  ;;  %v1090_v29 = vpop.f32.mrf.mxu0  ;;  %v1125_v19 = vpack.c.bf16 %v1086_v18, %v939_v7 }
 0x10f   : > { %v895_v24 = vadd.f32 %v894_v21, %v846_v23 }
 0x111   : > { %v944_v34 = vadd.f32 %v2735_v31, %v895_v24  ;;  %v1038_v41 = vpop.f32.mrf.mxu2  ;;  %v999_v5 = vpop.f32.mrf.mxu3  ;;  %v851_v31 = vadd.f32 %v2764_v48, %v417_v4  ;;  %v998_v24 = vadd.f32 %v997_v30, %v417_v4 }
 0x112   : > { %v1039_v44 = vadd.f32 %v1038_v41, %v990_v28 }
 0x114   : > { %v1088_v56 = vadd.f32 %v1087_v54, %v1039_v44  ;;  %v995_v54 = vadd.f32 %v994_v12, %v412_v42  ;;  %v427_v42 = vpop.permute.xlu0 %426 }
 0x116   : > { %v896_v9 = vpop.f32.mrf.mxu1  ;;  %v1092_v58 = vpop.f32.mrf.mxu0  ;;  %v1126_v36 = vpack.c.bf16 %v1088_v56, %v941_v15  ;;  %v1149_v15 = vunpack.c.l.bf16 %v1125_v19 }
 0x117   : > { %v897_v46 = vadd.f32 %v896_v9, %v848_v53 }
 0x118   : > { %v1152_v28 = vunpack.c.h.bf16 %v1126_v36  ;;  %v1157_v41 = vmul.f32 0.5, %v1149_v15 }
 0x119   : > { %v946_v2 = vadd.f32 %v2743_v37, %v897_v46  ;;  %v1041_v6 = vpop.f32.mrf.mxu2  ;;  %v1150_v37 = vunpack.c.h.bf16 %v1125_v19  ;;  %v1002_v45 = vpop.f32.mrf.mxu3  ;;  %v856_v19 = vadd.f32 %v2786_v60, %v427_v42 }
 0x11a   : > { %v1042_v7 = vadd.f32 %v1041_v6, %v993_v27  ;;  %v1160_v53 = vmul.f32 0.5, %v1152_v28 }
 0x11c   : > { %v1091_v62 = vadd.f32 %v1090_v29, %v1042_v7  ;;  %v1151_v29 = vunpack.c.l.bf16 %v1126_v36  ;;  %v1000_v7 = vadd.f32 %v999_v5, %v422_v16 }
 0x11e   : > { %v899_v32 = vpop.f32.mrf.mxu1  ;;  %v1095_v11 = vpop.f32.mrf.mxu0  ;;  %v1127_v13 = vpack.c.bf16 %v1091_v62, %v944_v34  ;;  %v1158_v34 = vmul.f32 0.5, %v1150_v37  ;;  %v1159_v52 = vmul.f32 0.5, %v1151_v29 }
 0x11f   : > { %v900_v10 = vadd.f32 %v899_v32, %v851_v31 }
 0x120   : > { %v1165_v56 = vpack.c.bf16 %v1158_v34, %v1157_v41  ;;  %v1166_v36 = vpack.c.bf16 %v1160_v53, %v1159_v52  ;;  %v1153_v31 = vunpack.c.l.bf16 %v1127_v13  ;;  %v1154_v62 = vunpack.c.h.bf16 %v1127_v13  ;;  %v437_v13 = vpop.permute.xlu2 %436 }
 0x121   : > { %v949_v40 = vadd.f32 %v2758_v55, %v900_v10  ;;  %v1043_v14 = vpop.f32.mrf.mxu2  ;;  %v2817_v10 = vpop.permute.xlu1 %431 }
 0x122   : > { %v1044_v17 = vadd.f32 %v1043_v14, %v995_v54  ;;  %v1169_v4 = vunpack.c.l.bf16 %v1165_v56  ;;  %v1171_v60 = vunpack.c.l.bf16 %v1166_v36  ;;  %v858_v54 = vadd.f32 %v2794_v0, %v2817_v10 }
 0x123   : > { %v1172_v15 = vunpack.c.h.bf16 %v1166_v36  ;;  %v1161_v37 = vmul.f32 0.5, %v1153_v31 }
 0x124   : > { %v1093_v18 = vadd.f32 %v1092_v58, %v1044_v17  ;;  %v2812_v58 = vpop.f32.mrf.mxu3  ;;  %2109 = vtanh.f32 %v1169_v4 }
 0x126   : > { %v901_v23 = vpop.f32.mrf.mxu1  ;;  %v1097_v48 = vpop.f32.mrf.mxu0  ;;  %v2808_v44 = vpack.c.bf16 %v1093_v18, %v946_v2 }
 0x127   : > { %v902_v21 = vadd.f32 %v901_v23, %v853_v3 }
 0x129   : > { %v951_v55 = vadd.f32 %v2768_v49, %v902_v21  ;;  %v1046_v12 = vpop.f32.mrf.mxu2  ;;  %v1170_v49 = vunpack.c.h.bf16 %v1165_v56 }
 0x12a   : > { %v1047_v9 = vadd.f32 %v1046_v12, %v998_v24  ;;  %v2110_v29 = vpop.eup %2109 }
 0x12b   : > { %2111 = vtanh.f32 %v1170_v49 }
 0x12c   : > { %v1096_v6 = vadd.f32 %v1095_v11, %v1047_v9  ;;  %2113 = vtanh.f32 %v1171_v60  ;;  %v1007_v16 = vpop.f32.mrf.mxu3 }
 0x12d   : > { %2115 = vtanh.f32 %v1172_v15  ;;  %v1156_v15 = vunpack.c.h.bf16 %v2808_v44 }
 0x12e   : > { %v904_v46 = vpop.f32.mrf.mxu1  ;;  %v1100_v27 = vpop.f32.mrf.mxu0  ;;  %v1129_v14 = vpack.c.bf16 %v1096_v6, %v949_v40  ;;  %v1003_v40 = vadd.f32 %v1002_v45, %v427_v42 }
 0x12f   : > { %v905_v30 = vadd.f32 %v904_v46, %v856_v19 }
 0x130   : > { %v1237_v18 = vunpack.c.l.bf16 %v1129_v14  ;;  %v1238_v21 = vunpack.c.h.bf16 %v1129_v14 }
 0x131   : > { %v2815_v2 = vadd.f32 %v2782_v57, %v905_v30  ;;  %v1048_v32 = vpop.f32.mrf.mxu2  ;;  %v1162_v57 = vmul.f32 0.5, %v1154_v62  ;;  %v2112_v34 = vpop.eup %2111 }
 0x132   : > { %v1049_v3 = vadd.f32 %v1048_v32, %v1000_v7  ;;  %v1245_v12 = vmul.f32 0.5, %v1237_v18  ;;  %v1246_v52 = vmul.f32 0.5, %v1238_v21  ;;  %v2114_v56 = vpop.eup %2113  ;;  %v1185_v30 = vpack.c.bf16 %v2112_v34, %v2110_v29 }
 0x133   : > { %v1167_v28 = vpack.c.bf16 %v1162_v57, %v1161_v37  ;;  %v1008_v34 = vadd.f32 %v1007_v16, %v437_v13 }
 0x134   : > { %v1098_v17 = vadd.f32 %v1097_v48, %v1049_v3  ;;  %v861_v48 = vadd.f32 %v2719_v22, %v437_v13  ;;  %v1253_v45 = vpack.c.bf16 %v1246_v52, %v1245_v12  ;;  %v2830_v22 = vpop.permute.xlu0 %441  ;;  %v1189_v62 = vunpack.c.l.bf16 %v1185_v30  ;;  %v2848_v13 = vpop.permute.xlu2 %451 }
 0x135   : > { %v1174_v4 = vunpack.c.h.bf16 %v1167_v28  ;;  %v1190_v32 = vunpack.c.h.bf16 %v1185_v30  ;;  %v1155_v3 = vunpack.c.l.bf16 %v2808_v44 }
 0x136   : > { %v906_v11 = vpop.f32.mrf.mxu1  ;;  %v2821_v5 = vpop.f32.mrf.mxu0  ;;  %v1130_v24 = vpack.c.bf16 %v1098_v17, %v951_v55  ;;  %v1173_v55 = vunpack.c.l.bf16 %v1167_v28  ;;  %v1257_v37 = vunpack.c.l.bf16 %v1253_v45  ;;  %v1197_v18 = vadd.f32 1.0, %v1189_v62 }
 0x137   : > { %v907_v23 = vadd.f32 %v906_v11, %v858_v54  ;;  %v2832_v54 = vpop.f32.mrf.mxu3  ;;  %v863_v11 = vadd.f32 %v2726_v26, %v2830_v22  ;;  %v1198_v21 = vadd.f32 1.0, %v1190_v32  ;;  %v1163_v28 = vmul.f32 0.5, %v1155_v3 }
 0x138   : > { %v1239_v53 = vunpack.c.l.bf16 %v1130_v24  ;;  %v1240_v19 = vunpack.c.h.bf16 %v1130_v24  ;;  %2117 = vtanh.f32 %v1173_v55  ;;  %v1005_v26 = vadd.f32 %v2812_v58, %v2817_v10 }
 0x139   : > { %v2824_v0 = vadd.f32 %v2790_v61, %v907_v23  ;;  %v1051_v41 = vpop.f32.mrf.mxu2  ;;  %v2116_v61 = vpop.eup %2115  ;;  %2119 = vtanh.f32 %v1174_v4 }
 0x13a   : > { %v1052_v9 = vadd.f32 %v1051_v41, %v1003_v40  ;;  %v1247_v42 = vmul.f32 0.5, %v1239_v53  ;;  %v1248_v49 = vmul.f32 0.5, %v1240_v19  ;;  %v1186_v60 = vpack.c.bf16 %v2116_v61, %v2114_v56 }
 0x13b   : > { %v1164_v41 = vmul.f32 0.5, %v1156_v15  ;;  %2121 = vtanh.f32 %v1257_v37 }
 0x13c   : > { %v1101_v31 = vadd.f32 %v1100_v27, %v1052_v9  ;;  %v1254_v57 = vpack.c.bf16 %v1248_v49, %v1247_v42  ;;  %v1258_v27 = vunpack.c.h.bf16 %v1253_v45  ;;  %v1191_v24 = vunpack.c.l.bf16 %v1186_v60  ;;  %v2852_v4 = vpop.permute.xlu0 %456 }
 0x13d   : > { %v1192_v29 = vunpack.c.h.bf16 %v1186_v60  ;;  %v1205_v9 = vpack.c.bf16 %v1198_v21, %v1197_v18  ;;  %v1168_v55 = vpack.c.bf16 %v1164_v41, %v1163_v28 }
 0x13e   : > { %v909_v46 = vpop.f32.mrf.mxu1  ;;  %v1105_v6 = vpop.f32.mrf.mxu0  ;;  %v1131_v17 = vpack.c.bf16 %v1101_v31, %v2815_v2  ;;  %2123 = vtanh.f32 %v1258_v27  ;;  %v1260_v2 = vunpack.c.h.bf16 %v1254_v57  ;;  %v2864_v27 = vadd.f32 %v2747_v39, %v2848_v13 }
 0x13f   : > { %v910_v36 = vadd.f32 %v909_v46, %v861_v48  ;;  %v2118_v44 = vpop.eup %2117  ;;  %v1259_v48 = vunpack.c.l.bf16 %v1254_v57  ;;  %v1199_v46 = vadd.f32 1.0, %v1191_v24  ;;  %v1200_v16 = vadd.f32 1.0, %v1192_v29  ;;  %v1012_v61 = vpop.f32.mrf.mxu3 }
 0x140   : > { %v2120_v52 = vpop.eup %2119  ;;  %v1241_v53 = vunpack.c.l.bf16 %v1131_v17  ;;  %v1242_v19 = vunpack.c.h.bf16 %v1131_v17  ;;  %v1209_v60 = vunpack.c.l.bf16 %v1205_v9  ;;  %v1176_v17 = vunpack.c.h.bf16 %v1168_v55 }
 0x141   : > { %v2828_v7 = vadd.f32 %v2796_v1, %v910_v36  ;;  %v1053_v14 = vpop.f32.mrf.mxu2  ;;  %v2838_v1 = vpop.permute.xlu1 %446  ;;  %2125 = vtanh.f32 %v1259_v48  ;;  %v1206_v15 = vpack.c.bf16 %v1200_v16, %v1199_v46 }
 0x142   : > { %v1054_v58 = vadd.f32 %v1053_v14, %v1005_v26  ;;  %2127 = vtanh.f32 %v1260_v2  ;;  %v1249_v45 = vmul.f32 0.5, %v1241_v53  ;;  %v1250_v42 = vmul.f32 0.5, %v1242_v19  ;;  %v2122_v62 = vpop.eup %2121  ;;  %v2877_v26 = vpop.permute.xlu2 %466 }
 0x143   : > { %v2858_v32 = vadd.f32 %v2739_v35, %v2838_v1  ;;  %v1210_v14 = vunpack.c.h.bf16 %v1205_v9  ;;  %v2872_v35 = vadd.f32 %v2762_v47, %v2852_v4  ;;  %v1217_v28 = vmul.f32 0.5, %v1209_v60 }
 0x144   : > { %v2124_v3 = vpop.eup %2123  ;;  %v1103_v37 = vadd.f32 %v2821_v5, %v1054_v58  ;;  %v1255_v21 = vpack.c.bf16 %v1250_v42, %v1249_v45  ;;  %v1212_v2 = vunpack.c.h.bf16 %v1206_v15  ;;  %v1013_v42 = vadd.f32 %v1012_v61, %v2838_v1 }
 0x145   : > { %v1218_v39 = vmul.f32 0.5, %v1210_v14 }
 0x146   : > { %v911_v23 = vpop.f32.mrf.mxu1  ;;  %v2846_v56 = vpop.f32.mrf.mxu0  ;;  %v1261_v9 = vunpack.c.l.bf16 %v1255_v21  ;;  %v1262_v58 = vunpack.c.h.bf16 %v1255_v21 }
 0x147   : > { %v912_v40 = vadd.f32 %v911_v23, %v863_v11  ;;  %v1175_v11 = vunpack.c.l.bf16 %v1168_v55  ;;  %v2126_v5 = vpop.eup %2125 }
 0x148   : > { %v2128_v41 = vpop.eup %2127 }
 0x149   : > { %v2844_v12 = vadd.f32 %v2799_v8, %v912_v40  ;;  %v1056_v30 = vpop.f32.mrf.mxu2  ;;  %v2850_v36 = vpop.permute.xlu1 %461  ;;  %v1187_v8 = vpack.c.bf16 %v2120_v52, %v2118_v44  ;;  %v1273_v40 = vpack.c.bf16 %v2124_v3, %v2122_v62  ;;  %2129 = vtanh.f32 %v1175_v11 }
 0x14a   : > { %v1057_v10 = vadd.f32 %v1056_v30, %v1008_v34  ;;  %v1132_v34 = vpack.c.bf16 %v1103_v37, %v2824_v0  ;;  %v1211_v44 = vunpack.c.l.bf16 %v1206_v15  ;;  %2131 = vtanh.f32 %v1176_v17 }
 0x14b   : > { %v1193_v23 = vunpack.c.l.bf16 %v1187_v8  ;;  %v1194_v18 = vunpack.c.h.bf16 %v1187_v8  ;;  %v1277_v30 = vunpack.c.l.bf16 %v1273_v40  ;;  %v1278_v16 = vunpack.c.h.bf16 %v1273_v40 }
 0x14c   : > { %v1106_v49 = vadd.f32 %v1105_v6, %v1057_v10  ;;  %v2868_v6 = vadd.f32 %v2772_v51, %v2850_v36  ;;  %v1010_v51 = vadd.f32 %v2832_v54, %v2830_v22  ;;  %v1274_v55 = vpack.c.bf16 %v2128_v41, %v2126_v5  ;;  %v2879_v10 = vpop.f32.mrf.mxu3 }
 0x14d   : > { %v1201_v53 = vadd.f32 1.0, %v1193_v23  ;;  %v1202_v19 = vadd.f32 1.0, %v1194_v18  ;;  %v2883_v0 = vadd.f32 %v2784_v59, %v2877_v26  ;;  %v1243_v22 = vunpack.c.l.bf16 %v1132_v34  ;;  %v2890_v59 = vpop.permute.xlu0 %471 }
 0x14e   : > { %v2854_v31 = vpop.f32.mrf.mxu1  ;;  %v1133_v57 = vpack.c.bf16 %v1106_v49, %v2828_v7  ;;  %v1110_v47 = vpop.f32.mrf.mxu0  ;;  %v1244_v54 = vunpack.c.h.bf16 %v1132_v34  ;;  %v2887_v62 = vpack.c.bf16 %v1218_v39, %v1217_v28  ;;  %v1219_v60 = vmul.f32 0.5, %v1211_v44 }
 0x14f   : > { %v2130_v14 = vpop.eup %2129  ;;  %v1207_v3 = vpack.c.bf16 %v1202_v19, %v1201_v53  ;;  %2133 = vtanh.f32 %v1261_v9  ;;  %v1220_v11 = vmul.f32 0.5, %v1212_v2  ;;  %v1286_v17 = vadd.f32 1.0, %v1278_v16 }
 0x150   : > { %v1377_v24 = vunpack.c.l.bf16 %v1133_v57  ;;  %v1378_v7 = vunpack.c.h.bf16 %v1133_v57  ;;  %v2132_v37 = vpop.eup %2131  ;;  %v1285_v57 = vadd.f32 1.0, %v1277_v30  ;;  %v1279_v23 = vunpack.c.l.bf16 %v1274_v55 }
 0x151   : > { %v1058_v29 = vpop.f32.mrf.mxu2  ;;  %2135 = vtanh.f32 %v1262_v58  ;;  %v1280_v18 = vunpack.c.h.bf16 %v1274_v55  ;;  %v1251_v1 = vmul.f32 0.5, %v1243_v22  ;;  %v1252_v61 = vmul.f32 0.5, %v1244_v54 }
 0x152   : > { %v1385_v48 = vmul.f32 0.5, %v1377_v24  ;;  %v1386_v52 = vmul.f32 0.5, %v1378_v7  ;;  %v1059_v46 = vadd.f32 %v1058_v29, %v1010_v51  ;;  %v915_v21 = vadd.f32 %v2854_v31, %v2858_v32 }
 0x153   : > { %v1188_v29 = vpack.c.bf16 %v2132_v37, %v2130_v14  ;;  %v1229_v41 = vunpack.c.l.bf16 %v2887_v62  ;;  %v1293_v51 = vpack.c.bf16 %v1286_v17, %v1285_v57  ;;  %v2899_v44 = vpack.c.bf16 %v1220_v11, %v1219_v60 }
 0x154   : > { %v1108_v8 = vadd.f32 %v2846_v56, %v1059_v46  ;;  %v1393_v49 = vpack.c.bf16 %v1386_v52, %v1385_v48  ;;  %v1213_v48 = vunpack.c.l.bf16 %v1207_v3  ;;  %v1287_v31 = vadd.f32 1.0, %v1279_v23  ;;  %v1017_v46 = vpop.f32.mrf.mxu3 }
 0x155   : > { %v2134_v52 = vpop.eup %2133  ;;  %v1288_v32 = vadd.f32 1.0, %v1280_v18  ;;  %v1256_v9 = vpack.c.bf16 %v1252_v61, %v1251_v1  ;;  %v1214_v30 = vunpack.c.h.bf16 %v1207_v3  ;;  %v1195_v16 = vunpack.c.l.bf16 %v1188_v29 }
 0x156   : > { %v916_v45 = vpop.f32.mrf.mxu1  ;;  %v1134_v15 = vpack.c.bf16 %v1108_v8, %v2844_v12  ;;  %v1397_v24 = vunpack.c.l.bf16 %v1393_v49  ;;  %v2896_v12 = vadd.f32 %v2792_v63, %v2890_v59  ;;  %v1398_v28 = vunpack.c.h.bf16 %v1393_v49  ;;  %v1112_v39 = vpop.f32.mrf.mxu0 }
 0x157   : > { %v2136_v19 = vpop.eup %2135  ;;  %v964_v63 = vadd.f32 %v2717_v20, %v915_v21  ;;  %v1196_v55 = vunpack.c.h.bf16 %v1188_v29  ;;  %v1297_v22 = vunpack.c.l.bf16 %v1293_v51  ;;  %v1232_v49 = vunpack.c.h.bf16 %v2899_v44 }
 0x158   : > { %v1379_v5 = vunpack.c.l.bf16 %v1134_v15  ;;  %v1380_v40 = vunpack.c.h.bf16 %v1134_v15  ;;  %2137 = vtanh.f32 %v1397_v24  ;;  %v1298_v60 = vunpack.c.h.bf16 %v1293_v51 }
 0x159   : > { %v1061_v56 = vpop.f32.mrf.mxu2  ;;  %2139 = vtanh.f32 %v1398_v28  ;;  %v1294_v14 = vpack.c.bf16 %v1288_v32, %v1287_v31  ;;  %v1221_v11 = vmul.f32 0.5, %v1213_v48  ;;  %v1015_v20 = vadd.f32 %v2879_v10, %v2848_v13 }
 0x15a   : > { %v1062_v7 = vadd.f32 %v1061_v56, %v1013_v42  ;;  %v1387_v2 = vmul.f32 0.5, %v1379_v5  ;;  %v1388_v53 = vmul.f32 0.5, %v1380_v40  ;;  %v1231_v42 = vunpack.c.l.bf16 %v2899_v44 }
 0x15b   : > { %v1263_v3 = vunpack.c.l.bf16 %v1256_v9  ;;  %v917_v37 = vadd.f32 %v916_v45, %v2864_v27  ;;  %v1222_v57 = vmul.f32 0.5, %v1214_v30  ;;  %v1203_v17 = vadd.f32 1.0, %v1195_v16 }
 0x15c   : > { %v1111_v34 = vadd.f32 %v1110_v47, %v1062_v7  ;;  %v1230_v47 = vunpack.c.h.bf16 %v2887_v62  ;;  %v1394_v15 = vpack.c.bf16 %v1388_v53, %v1387_v2  ;;  %v1204_v23 = vadd.f32 1.0, %v1196_v55  ;;  %v1019_v32 = vpop.f32.mrf.mxu3 }
 0x15d   : > { %v1275_v56 = vpack.c.bf16 %v2136_v19, %v2134_v52  ;;  %v1264_v18 = vunpack.c.h.bf16 %v1256_v9  ;;  %v1305_v61 = vmul.f32 0.5, %v1297_v22  ;;  %v1306_v7 = vmul.f32 0.5, %v1298_v60 }
 0x15e   : > { %v919_v58 = vpop.f32.mrf.mxu1  ;;  %v1135_v54 = vpack.c.bf16 %v1111_v34, %v964_v63  ;;  %v2138_v1 = vpop.eup %2137  ;;  %v1299_v29 = vunpack.c.l.bf16 %v1294_v14  ;;  %v1300_v28 = vunpack.c.h.bf16 %v1294_v14  ;;  %v1399_v51 = vunpack.c.l.bf16 %v1394_v15 }
 0x15f   : > { %v2140_v40 = vpop.eup %2139  ;;  %v1115_v34 = vpop.f32.mrf.mxu0  ;;  %2141 = vtanh.f32 %v1263_v3  ;;  %v1400_v13 = vunpack.c.h.bf16 %v1394_v15  ;;  %v966_v27 = vadd.f32 %v2724_v25, %v917_v37  ;;  %v1281_v45 = vunpack.c.l.bf16 %v1275_v56 }
 0x160   : > { %v1381_v21 = vunpack.c.l.bf16 %v1135_v54  ;;  %v1382_v24 = vunpack.c.h.bf16 %v1135_v54  ;;  %2143 = vtanh.f32 %v1264_v18  ;;  %v1018_v48 = vadd.f32 %v1017_v46, %v2852_v4 }
 0x161   : > { %v1063_v8 = vpop.f32.mrf.mxu2  ;;  %v920_v52 = vadd.f32 %v919_v58, %v2872_v35  ;;  %v1413_v31 = vpack.c.bf16 %v2140_v40, %v2138_v1  ;;  %v2911_v63 = vpack.c.bf16 %v1204_v23, %v1203_v17  ;;  %v1282_v30 = vunpack.c.h.bf16 %v1275_v56 }
 0x162   : > { %v1064_v5 = vadd.f32 %v1063_v8, %v1015_v20  ;;  %v1389_v2 = vmul.f32 0.5, %v1381_v21  ;;  %v1390_v53 = vmul.f32 0.5, %v1382_v24  ;;  %2145 = vtanh.f32 %v1399_v51 }
 0x163   : > { %v1308_v55 = vmul.f32 0.5, %v1300_v28  ;;  %2147 = vtanh.f32 %v1400_v13  ;;  %v2914_v4 = vpack.c.bf16 %v1306_v7, %v1305_v61  ;;  %v969_v35 = vadd.f32 %v2737_v33, %v920_v52 }
 0x164   : > { %v1113_v10 = vadd.f32 %v1112_v39, %v1064_v5  ;;  %v1307_v39 = vmul.f32 0.5, %v1299_v29  ;;  %v1289_v8 = vadd.f32 1.0, %v1281_v45  ;;  %v1417_v60 = vunpack.c.l.bf16 %v1413_v31  ;;  %v1022_v52 = vpop.f32.mrf.mxu3 }
 0x165   : > { %v2142_v54 = vpop.eup %2141  ;;  %v1418_v14 = vunpack.c.h.bf16 %v1413_v31  ;;  %v1395_v15 = vpack.c.bf16 %v1390_v53, %v1389_v2  ;;  %v1290_v3 = vadd.f32 1.0, %v1282_v30  ;;  %v1317_v33 = vunpack.c.l.bf16 %v2914_v4 }
 0x166   : > { %v1136_v19 = vpack.c.bf16 %v1113_v10, %v966_v27  ;;  %v921_v16 = vpop.f32.mrf.mxu1  ;;  %v2144_v20 = vpop.eup %2143  ;;  %v2923_v56 = vpack.c.bf16 %v1222_v57, %v1221_v11  ;;  %v1215_v18 = vunpack.c.l.bf16 %v2911_v63  ;;  %v1216_v1 = vunpack.c.h.bf16 %v2911_v63  ;;  %v1141_v11 = vld [vmem:[%s2920_s7] sm:$0xff] }
 0x167   : > { %v1020_v21 = vadd.f32 %v1019_v32, %v2850_v36  ;;  %v1117_v40 = vpop.f32.mrf.mxu0  ;;  %v2928_v7 = vpack.c.bf16 %v1308_v55, %v1307_v39  ;;  %v1425_v28 = vadd.f32 1.0, %v1417_v60  ;;  %v1426_v51 = vadd.f32 1.0, %v1418_v14 }
 0x168   : > { %v1383_v46 = vunpack.c.l.bf16 %v1136_v19  ;;  %v1384_v58 = vunpack.c.h.bf16 %v1136_v19  ;;  %v2146_v61 = vpop.eup %2145  ;;  %v922_v13 = vadd.f32 %v921_v16, %v2868_v6  ;;  %v1295_v27 = vpack.c.bf16 %v1290_v3, %v1289_v8 }
 0x169   : > { %v1066_v9 = vpop.f32.mrf.mxu2  ;;  %v2148_v29 = vpop.eup %2147  ;;  %v1402_v10 = vunpack.c.h.bf16 %v1395_v15  ;;  %v2932_v31 = vmul.f32 0.5, %v1215_v18  ;;  %v1318_v2 = vunpack.c.h.bf16 %v2914_v4  ;;  %v2935_v53 = vmul.f32 %v1317_v33, %v1141_v11  ;;  %v1143_v11 = vld [vmem:[%s2920_s7 + $0x10] sm:$0xff] }
 0x16a   : > { %v1067_v25 = vadd.f32 %v1066_v9, %v1018_v48  ;;  %v1391_v37 = vmul.f32 0.5, %v1383_v46  ;;  %v1392_v17 = vmul.f32 0.5, %v1384_v58  ;;  %v1276_v48 = vpack.c.bf16 %v2144_v20, %v2142_v54 }
 0x16b   : > { %v1414_v32 = vpack.c.bf16 %v2148_v29, %v2146_v61  ;;  %v1319_v6 = vunpack.c.l.bf16 %v2928_v7  ;;  %v1433_v9 = vpack.c.bf16 %v1426_v51, %v1425_v28  ;;  %v971_v30 = vadd.f32 %v2745_v38, %v922_v13  ;;  %v1142_v29 = vld [vmem:[%s2920_s7 + $0x8] sm:$0xff] }
 0x16c   : > { %v1116_v22 = vadd.f32 %v1115_v34, %v1067_v25  ;;  %v1401_v34 = vunpack.c.l.bf16 %v1395_v15  ;;  %v1396_v45 = vpack.c.bf16 %v1392_v17, %v1391_v37  ;;  %v1301_v25 = vunpack.c.l.bf16 %v1295_v27  ;;  %v1024_v51 = vpop.f32.mrf.mxu3 }
 0x16d   : > { %v1302_v39 = vunpack.c.h.bf16 %v1295_v27  ;;  %v1023_v46 = vadd.f32 %v1022_v52, %v2877_v26  ;;  %v1320_v4 = vunpack.c.h.bf16 %v2928_v7  ;;  %v1284_v54 = vunpack.c.h.bf16 %v1276_v48 }
 0x16e   : > { %v1137_v23 = vpack.c.bf16 %v1116_v22, %v969_v35  ;;  %v924_v19 = vpop.f32.mrf.mxu1  ;;  %v1403_v55 = vunpack.c.l.bf16 %v1396_v45  ;;  %v1283_v35 = vunpack.c.l.bf16 %v1276_v48  ;;  %v1419_v8 = vunpack.c.l.bf16 %v1414_v32 }
 0x16f   : > { %v1420_v60 = vunpack.c.h.bf16 %v1414_v32  ;;  %v1404_v14 = vunpack.c.h.bf16 %v1396_v45  ;;  %v1437_v20 = vunpack.c.l.bf16 %v1433_v9  ;;  %v925_v38 = vadd.f32 %v924_v19, %v2883_v0  ;;  %v1120_v33 = vpop.f32.mrf.mxu0 }
 0x170   : > { %v1325_v24 = vunpack.c.l.bf16 %v1137_v23  ;;  %v1326_v5 = vunpack.c.h.bf16 %v1137_v23  ;;  %v1438_v23 = vunpack.c.h.bf16 %v1433_v9  ;;  %v1354_v19 = vmul.f32 %v1318_v2, %v1142_v29 }
 0x171   : > { %v1068_v57 = vpop.f32.mrf.mxu2  ;;  %v1428_v7 = vadd.f32 1.0, %v1420_v60  ;;  %v974_v13 = vadd.f32 %v2760_v43, %v925_v38  ;;  %v1445_v45 = vmul.f32 0.5, %v1437_v20  ;;  %v1025_v43 = vadd.f32 %v1024_v51, %v2890_v59 }
 0x172   : > { %2149 = vtanh.f32 %v1325_v24  ;;  %v1069_v36 = vadd.f32 %v1068_v57, %v1020_v21  ;;  %v1309_v21 = vmul.f32 0.5, %v1301_v25  ;;  %v1310_v24 = vmul.f32 0.5, %v1302_v39  ;;  %v1144_v57 = vld [vmem:[%s2920_s7 + $0x18] sm:$0xff] }
 0x173   : > { %2151 = vtanh.f32 %v1326_v5  ;;  %v1291_v5 = vadd.f32 1.0, %v1283_v35  ;;  %v1446_v48 = vmul.f32 0.5, %v1438_v23  ;;  %v1355_v39 = vmul.f32 %v1319_v6, %v1143_v11 }
 0x174   : > { %2153 = vtanh.f32 %v1401_v34  ;;  %v1118_v16 = vadd.f32 %v1117_v40, %v1069_v36  ;;  %v1427_v40 = vadd.f32 1.0, %v1419_v8  ;;  %v1233_v63 = vunpack.c.l.bf16 %v2923_v56 }
 0x175   : > { %2155 = vtanh.f32 %v1402_v10  ;;  %v1292_v10 = vadd.f32 1.0, %v1284_v54  ;;  %v1453_v62 = vpack.c.bf16 %v1446_v48, %v1445_v45 }
 0x176   : > { %v1138_v58 = vpack.c.bf16 %v1118_v16, %v971_v30  ;;  %2157 = vtanh.f32 %v1403_v55  ;;  %v926_v36 = vpop.f32.mrf.mxu1  ;;  %v1434_v25 = vpack.c.bf16 %v1428_v7, %v1427_v40  ;;  %v1356_v55 = vmul.f32 %v1320_v4, %v1144_v57 }
 0x177   : > { %v1296_v8 = vpack.c.bf16 %v1292_v10, %v1291_v5  ;;  %v1122_v20 = vpop.f32.mrf.mxu0  ;;  %v1458_v5 = vunpack.c.h.bf16 %v1453_v62 }
 0x178   : > { %v2150_v22 = vpop.eup %2149  ;;  %v1327_v3 = vunpack.c.l.bf16 %v1138_v58  ;;  %v1328_v37 = vunpack.c.h.bf16 %v1138_v58  ;;  %v1440_v6 = vunpack.c.h.bf16 %v1434_v25 }
 0x179   : > { %v2152_v15 = vpop.eup %2151  ;;  %v1071_v17 = vpop.f32.mrf.mxu2  ;;  %v1304_v23 = vunpack.c.h.bf16 %v1296_v8 }
 0x17a   : > { %v1341_v26 = vpack.c.bf16 %v2152_v15, %v2150_v22  ;;  %v1072_v18 = vadd.f32 %v1071_v17, %v1023_v46  ;;  %v2154_v61 = vpop.eup %2153  ;;  %2159 = vtanh.f32 %v1327_v3  ;;  %v1303_v17 = vunpack.c.l.bf16 %v1296_v8 }
 0x17b   : > { %v2156_v0 = vpop.eup %2155  ;;  %2161 = vtanh.f32 %v1404_v14  ;;  %v1448_v29 = vmul.f32 0.5, %v1440_v6 }
 0x17c   : > { %v1345_v28 = vunpack.c.l.bf16 %v1341_v26  ;;  %v1346_v34 = vunpack.c.h.bf16 %v1341_v26  ;;  %2163 = vtanh.f32 %v1328_v37  ;;  %v1121_v27 = vadd.f32 %v1120_v33, %v1072_v18  ;;  %v2158_v16 = vpop.eup %2157 }
 0x17d   : > { %v1415_v32 = vpack.c.bf16 %v2156_v0, %v2154_v61 }
 0x17e   : > { %v1361_v52 = vmul.f32 %v1345_v28, %v1229_v41  ;;  %v1362_v9 = vmul.f32 %v1346_v34, %v1230_v47  ;;  %v1139_v30 = vpack.c.bf16 %v1121_v27, %v974_v13  ;;  %v927_v41 = vadd.f32 %v926_v36, %v2896_v12 }
 0x17f   : > { %v2957_v47 = vpack.c.bf16 %v1310_v24, %v1309_v21  ;;  %v1421_v15 = vunpack.c.l.bf16 %v1415_v32  ;;  %v1422_v59 = vunpack.c.h.bf16 %v1415_v32  ;;  %v1439_v12 = vunpack.c.l.bf16 %v1434_v25  ;;  %v1145_v25 = vld [vmem:[%s2920_s7 + $0x20] sm:$0xff] }
 0x180   : > { %v2160_v35 = vpop.eup %2159  ;;  %v1369_v46 = vadd.f32 %v1361_v52, %v2935_v53  ;;  %v1370_v58 = vadd.f32 %v1362_v9, %v1354_v19  ;;  %v1329_v22 = vunpack.c.l.bf16 %v1139_v30  ;;  %v1330_v53 = vunpack.c.h.bf16 %v1139_v30 }
 0x181   : > { %v1073_v54 = vpop.f32.mrf.mxu2  ;;  %v2162_v2 = vpop.eup %2161  ;;  %v976_v3 = vadd.f32 %v2770_v50, %v927_v41  ;;  %v1429_v18 = vadd.f32 1.0, %v1421_v15  ;;  %v1430_v61 = vadd.f32 1.0, %v1422_v59  ;;  %v1457_v24 = vunpack.c.l.bf16 %v1453_v62 }
 0x182   : > { %v1074_v60 = vadd.f32 %v1073_v54, %v1025_v43  ;;  %v2164_v14 = vpop.eup %2163  ;;  %2165 = vtanh.f32 %v1369_v46  ;;  %1481 = vst [vmem:[%s2961_s10] sm:$0xff] %v1369_v46  ;;  %v1416_v38 = vpack.c.bf16 %v2162_v2, %v2158_v16  ;;  %v1447_v7 = vmul.f32 0.5, %v1439_v12  ;;  %v1146_v43 = vld [vmem:[%s2920_s7 + $0x28] sm:$0xff] }
 0x183   : > { %2167 = vtanh.f32 %v1370_v58  ;;  %1482 = vst [vmem:[%s2961_s10 + $0x8] sm:$0xff] %v1370_v58  ;;  %v1342_v4 = vpack.c.bf16 %v2164_v14, %v2160_v35  ;;  %v1435_v45 = vpack.c.bf16 %v1430_v61, %v1429_v18  ;;  %v1321_v44 = vunpack.c.l.bf16 %v2957_v47  ;;  %v1147_v18 = vld [vmem:[%s2920_s7 + $0x30] sm:$0xff]  ;;  %v1148_v61 = vld [vmem:[%s2920_s7 + $0x38] sm:$0xff]  ;;  %s2203_s7 = sshra.s32 %s1539_s24, 4  ;;  %s2204_s7 = int_to_ptr.hbm [resolvable:$true] %s2203_s7 }
 0x184   : > { %2169 = vtanh.f32 %v1329_v22  ;;  %v1123_v37 = vadd.f32 %v1122_v20, %v1074_v60  ;;  %v1423_v28 = vunpack.c.l.bf16 %v1416_v38  ;;  %v1424_v13 = vunpack.c.h.bf16 %v1416_v38  ;;  %s2205_s9 = scalar_lea.hbm %s2204_s7, 64  ;;  %p2210_p1 = scmp.lt.s32.totalorder %s2204_s7, %s3067_s5 }
 0x185   : > { %v1347_v26 = vunpack.c.l.bf16 %v1342_v4  ;;  %v1348_v33 = vunpack.c.h.bf16 %v1342_v4  ;;  %2171 = vtanh.f32 %v1330_v53  ;;  %v1311_v32 = vmul.f32 0.5, %v1303_v17  ;;  %p2206_p12 = scmp.ne.s32.totalorder %s2204_s7, %s2205_s9 }
 0x186   : > { %v1140_v21 = vpack.c.bf16 %v1123_v37, %v976_v3  ;;  %v1312_v19 = vmul.f32 0.5, %v1304_v23  ;;  %v1454_v9 = vpack.c.bf16 %v1448_v29, %v1447_v7  ;;  %v1431_v30 = vadd.f32 1.0, %v1423_v28 }
 0x187   : > { %v1363_v0 = vmul.f32 %v1347_v26, %v1231_v42  ;;  %v1364_v40 = vmul.f32 %v1348_v33, %v1232_v49  ;;  %v1322_v42 = vunpack.c.h.bf16 %v2957_v47  ;;  %v1224_v49 = vmul.f32 0.5, %v1216_v1  ;;  %p2207_p13 = pnand %p2206_p12, %p2374_p4 }
 0x188   : > { %v2166_v50 = vpop.eup %2165  ;;  %v1331_v51 = vunpack.c.l.bf16 %v1140_v21  ;;  %v1332_v27 = vunpack.c.h.bf16 %v1140_v21  ;;  %v1432_v16 = vadd.f32 1.0, %v1424_v13  ;;  %v1442_v35 = vunpack.c.h.bf16 %v1435_v45 }
 0x189   : > { %v2168_v34 = vpop.eup %2167  ;;  %v1473_v11 = vmul.f32 %v2166_v50, %v1457_v24  ;;  %v1371_v57 = vadd.f32 %v1363_v0, %v1355_v39  ;;  %v1372_v52 = vadd.f32 %v1364_v40, %v1356_v55  ;;  %v1441_v55 = vunpack.c.l.bf16 %v1435_v45  ;;  %p2208_p0 = pneg %p2207_p13 }
 0x18a   : > { %v2170_v10 = vpop.eup %2169  ;;  %v1474_v48 = vmul.f32 %v2168_v34, %v1458_v5  ;;  %2173 = vtanh.f32 %v1331_v51  ;;  %v1234_v1 = vunpack.c.h.bf16 %v2923_v56  ;;  %v1228_v41 = vpack.c.bf16 %v1224_v49, %v2932_v31 }
 0x18b   : > { %1489 = vst [vmem:[%s2972_s12] sm:$0xff] %v1473_v11  ;;  %2175 = vtanh.f32 %v1371_v57  ;;  %v2172_v36 = vpop.eup %2171  ;;  %v1459_v54 = vunpack.c.l.bf16 %v1454_v9  ;;  %v1357_v2 = vmul.f32 %v1321_v44, %v1145_v25  ;;  %v1358_v8 = vmul.f32 %v1322_v42, %v1146_v43 }
 0x18c   : > { %1490 = vst [vmem:[%s2972_s12 + $0x8] sm:$0xff] %v1474_v48  ;;  %2177 = vtanh.f32 %v1372_v52  ;;  %v1343_v39 = vpack.c.bf16 %v2172_v36, %v2170_v10  ;;  %v1316_v62 = vpack.c.bf16 %v1312_v19, %v1311_v32  ;;  %v1460_v60 = vunpack.c.h.bf16 %v1454_v9 }
 0x18d   : > { %1483 = vst [vmem:[%s2961_s10 + $0x10] sm:$0xff] %v1371_v57  ;;  %2179 = vtanh.f32 %v1332_v27  ;;  %v1436_v14 = vpack.c.bf16 %v1432_v16, %v1431_v30  ;;  %v1449_v12 = vmul.f32 0.5, %v1441_v55  ;;  %v1450_v56 = vmul.f32 0.5, %v1442_v35 }
 0x18e   : > { %1484 = vst [vmem:[%s2961_s10 + $0x18] sm:$0xff] %v1372_v52  ;;  %v1349_v46 = vunpack.c.l.bf16 %v1343_v39  ;;  %v1350_v58 = vunpack.c.h.bf16 %v1343_v39  ;;  %v1235_v3 = vunpack.c.l.bf16 %v1228_v41  ;;  %v1323_v37 = vunpack.c.l.bf16 %v1316_v62 }
 0x18f   : > { %v1324_v17 = vunpack.c.h.bf16 %v1316_v62  ;;  %v1443_v26 = vunpack.c.l.bf16 %v1436_v14  ;;  %v1444_v33 = vunpack.c.h.bf16 %v1436_v14  ;;  %v1236_v21 = vunpack.c.h.bf16 %v1228_v41 }
 0x190   : > { %v2174_v22 = vpop.eup %2173  ;;  %v1365_v15 = vmul.f32 %v1349_v46, %v1233_v63  ;;  %v1366_v59 = vmul.f32 %v1350_v58, %v1234_v1  ;;  %v1455_v24 = vpack.c.bf16 %v1450_v56, %v1449_v12  ;;  %v1359_v40 = vmul.f32 %v1323_v37, %v1147_v18 }
 0x191   : > { %v2176_v47 = vpop.eup %2175  ;;  %v1360_v50 = vmul.f32 %v1324_v17, %v1148_v61  ;;  %v1451_v28 = vmul.f32 0.5, %v1443_v26  ;;  %v1452_v51 = vmul.f32 0.5, %v1444_v33 }
 0x192   : > { %v2178_v53 = vpop.eup %2177  ;;  %v1475_v6 = vmul.f32 %v2176_v47, %v1459_v54  ;;  %v1373_v20 = vadd.f32 %v1365_v15, %v1357_v2  ;;  %v1374_v38 = vadd.f32 %v1366_v59, %v1358_v8  ;;  %v1461_v34 = vunpack.c.l.bf16 %v1455_v24 }
 0x193   : > { %v2180_v31 = vpop.eup %2179  ;;  %v1476_v4 = vmul.f32 %v2178_v53, %v1460_v60  ;;  %v1462_v27 = vunpack.c.h.bf16 %v1455_v24  ;;  %v1456_v48 = vpack.c.bf16 %v1452_v51, %v1451_v28 }
 0x194   : > { %1491 = vst [vmem:[%s2972_s12 + $0x10] sm:$0xff] %v1475_v6  ;;  %v1344_v23 = vpack.c.bf16 %v2180_v31, %v2174_v22  ;;  %2181 = vtanh.f32 %v1373_v20 }
 0x195   : > { %1492 = vst [vmem:[%s2972_s12 + $0x18] sm:$0xff] %v1476_v4  ;;  %2183 = vtanh.f32 %v1374_v38 }
 0x196   : > { %1485 = vst [vmem:[%s2961_s10 + $0x20] sm:$0xff] %v1373_v20  ;;  %v1351_v5 = vunpack.c.l.bf16 %v1344_v23  ;;  %v1352_v0 = vunpack.c.h.bf16 %v1344_v23 }
 0x197   : > { %1486 = vst [vmem:[%s2961_s10 + $0x28] sm:$0xff] %v1374_v38 }
 0x198   : > { %v1367_v7 = vmul.f32 %v1351_v5, %v1235_v3  ;;  %v1368_v29 = vmul.f32 %v1352_v0, %v1236_v21 }
 0x19a   : > { %v1375_v13 = vadd.f32 %v1367_v7, %v1359_v40  ;;  %v1376_v11 = vadd.f32 %v1368_v29, %v1360_v50  ;;  %v2182_v57 = vpop.eup %2181 }
 0x19b   : > { %v2184_v10 = vpop.eup %2183  ;;  %v1477_v45 = vmul.f32 %v2182_v57, %v1461_v34 }
 0x19c   : > { %2185 = vtanh.f32 %v1375_v13  ;;  %1487 = vst [vmem:[%s2961_s10 + $0x30] sm:$0xff] %v1375_v13  ;;  %v1478_v52 = vmul.f32 %v2184_v10, %v1462_v27 }
 0x19d   : > { %2187 = vtanh.f32 %v1376_v11  ;;  %1488 = vst [vmem:[%s2961_s10 + $0x38] sm:$0xff] %v1376_v11  ;;  %s2209_s10 = scalar_lea.hbm %s3067_s5, 128 }
 0x19e   : > { %1493 = vst [vmem:[%s2972_s12 + $0x20] sm:$0xff] %v1477_v45  ;;  %p2211_p2 = scmp.lt.s32.totalorder %s2209_s10, %s2205_s9 }
 0x19f   : > { %1494 = vst [vmem:[%s2972_s12 + $0x28] sm:$0xff] %v1478_v52 }
 0x1a0   : > { %p2212_p3 = por %p2211_p2, %p2210_p1 }
 0x1a2   : > { %p2213_p5 = pnand %p2212_p3, %p2208_p0 }
 0x1a4   : > { %2216 = shalt.err (!%p2213_p5)
}
 0x1a5   : > { %s2302_s21 = smov 256   ;;  %s2303_s13 = smov 16   ;;  %v1463_v44 = vunpack.c.l.bf16 %v1456_v48  ;;  %v2186_v42 = vpop.eup %2185  ;;  %v1464_v49 = vunpack.c.h.bf16 %v1456_v48 }
 0x1a6   : > { %2044 = dma.vmem_to_hbm [thread:$0]  (%p2374_p4), %s1537_s17, 1024, %s1539_s24, %s1503_s29, %s2302_s21, %s2302_s21, %s2303_s13   ;;  %v2188_v36 = vpop.eup %2187 }
 0x1a7   : > { %s1517_s25 = sshll.u32 %s2972_s12, 4  ;;  %s1519_s0 = sshll.u32 %s1516_s27, 4  ;;  %v1479_v32 = vmul.f32 %v2186_v42, %v1463_v44  ;;  %v1480_v19 = vmul.f32 %v2188_v36, %v1464_v49  ;;  %s1518_s25 = int_to_ptr.vmem [resolvable:$true] %s1517_s25  ;;  %s1520_s0 = int_to_ptr.hbm [resolvable:$true] %s1519_s0 }
 0x1a8   : > { %s1498_s11 = scalar_lea.sflag [#allocation3], %s2943_s8  ;;  %s2231_s7 = sshra.s32 %s1520_s0, 4  ;;  %s2232_s7 = int_to_ptr.hbm [resolvable:$true] %s2231_s7 }
 0x1a9   : > { %1495 = vst [vmem:[%s2972_s12 + $0x30] sm:$0xff] %v1479_v32  ;;  %s2233_s9 = scalar_lea.hbm %s2232_s7, 64  ;;  %s2237_s27 = scalar_lea.hbm %s3066_s4, 128 }
 0x1aa   : > { %1496 = vst [vmem:[%s2972_s12 + $0x38] sm:$0xff] %v1480_v19  ;;  %p2234_p6 = scmp.ne.s32.totalorder %s2232_s7, %s2233_s9  ;;  %p2238_p10 = scmp.lt.s32.totalorder %s2232_s7, %s3066_s4 }
 0x1ab   : > { %p2239_p11 = scmp.lt.s32.totalorder %s2237_s27, %s2233_s9 }
 0x1ac   : > { %p2235_p7 = pnand %p2234_p6, %p2374_p4 }
 0x1ad   : > { %p2240_p12 = por %p2239_p11, %p2238_p10 }
 0x1ae   : > { %p2236_p9 = pneg %p2235_p7 }
 0x1b0   : > { %p2241_p13 = pnand %p2240_p12, %p2236_p9 }
 0x1b2   : > { %2244 = shalt.err (!%p2241_p13)
}
 0x1b3   : > { %2043 = dma.vmem_to_hbm [thread:$0]  (%p2374_p4), %s1518_s25, 1024, %s1520_s0, %s1498_s11, %s2302_s21, %s2302_s21, %s2303_s13  }
 0x1b4 PF: > { %p2054_p0 = scmp.ge.s32.totalorder %s2299_s23, 2  ;;  %s1553_s8 = sand.u32 1, %s2279_s18  }
 0x1b5   : > { %s1554_s12 = scalar_lea.sflag [#allocation3], %s1553_s8 }
 0x1b6   : > { %p2048_p1 = pnand %p2054_p0, %p2381_p8 }
 0x1b8   : > { %p2049_p2 = pneg %p2048_p1 }
 0x1ba   : > { %2270 = dma.done.wait (%p2049_p2), %s1554_s12, 1024  }
 0x1bb   : > { %2272 = vsyncadd (%p2049_p2), %s1554_s12, 4294966272  ;;  %s1564_s15 = scalar_lea.sflag [#allocation5], %s1553_s8 }
 0x1bc   : > { %2274 = dma.done.wait (%p2049_p2), %s1564_s15, 1024  }
 0x1bd   : > { %2276 = vsyncadd (%p2049_p2), %s1564_s15, 4294966272  ;;  %s22_s23 = sadd.s32 1, %s2299_s23   ;;  %s3072_s18 = smov %s2283_s19 }
 0x1be   : > { %p19_p3 = scmp.ge.s32.totalorder %s22_s23, 4   ;;  %s3073_s19 = smov %s2287_s20 }
 0x1bf   : > { %s3074_s20 = smov %s2387_s6  ;;  %s3075_s21 = smov %s2295_s22 }
 0x1c0   : > { %s3076_s22 = smov %s3078_s26  ;;  %21 = sbr.rel (!%p19_p3) target bundleno = 8 (0x8), region = 91 }
 0x1c5   :  { %1570 = vsyncpa [#allocation3], 1 }
 0x1c6   :  { %1572 = vsyncpa [#allocation3 + $0x1], 1 }
 0x1c7   :  { %1573 = vsyncpa [#allocation5], 1 }
 0x1c8   :  { %1575 = vsyncpa [#allocation5 + $0x1], 1 }

</bundles_post_ra>
